<compile_context>
chip_gen: v5e
topology: v5e:2x2
jax: 0.10.0
libtpu: 0.0.40
codegen_flags: <defaults>
</compile_context>

<pallas_src>
import jax
import jax.numpy as jnp
from jax.experimental import pallas as pl
from jax.experimental.pallas import tpu as pltpu


def icn_forward(x_nchw, weights_oihw, biases):
    """ICN.forward: chain of Conv2d(C, C, kernel_size=3, padding=1), fused in one kernel.

    x_nchw:       (B, C, H, W)      PyTorch NCHW layout
    weights_oihw: (L, C, C, 3, 3)   PyTorch OIHW layout per layer (Conv2d.weight)
    biases:       (L, C)            Conv2d.bias per layer
    """
    B, C, H, W = x_nchw.shape
    L = weights_oihw.shape[0]
    HW = H * W

    # Lane-dense I/O slab: (B, C, H*W) is a pure reshape of NCHW (no transpose).
    x2 = x_nchw.reshape(B, C, HW)
    # Per-tap (C_out, C_in) matrices, indexable on leading dims: (L, 3, 3, C_out, C_in).
    w_t = jnp.transpose(weights_oihw, (0, 3, 4, 1, 2))
    b2 = biases.reshape(L, C, 1)

    # 9 validity masks over the flattened spatial axis (one per (dy, dx) tap): position
    # i = h*W + w is valid for tap (dy, dx) iff (h+dy, w+dx) lies inside the image.
    # This replaces the zero halo / jnp.pad of the previous version.
    ii = jnp.arange(HW, dtype=jnp.int32)
    hh = ii // W
    ww = ii % W
    mask_list = []
    for ky in range(3):
        for kx in range(3):
            dy, dx = ky - 1, kx - 1
            valid = (hh + dy >= 0) & (hh + dy < H) & (ww + dx >= 0) & (ww + dx < W)
            mask_list.append(valid.astype(jnp.float32))
    masks = jnp.stack(mask_list, axis=0).reshape(9, 1, HW)

    def kernel(x_ref, w_ref, b_ref, m_ref, o_ref):
        # x_ref: (1, C, HW)  w_ref: (L, 3, 3, C, C)  b_ref: (L, C, 1)
        # m_ref: (9, 1, HW)  o_ref: (1, C, HW)
        def shift_flat(a, delta):
            # result[:, i] = a[:, (i + delta) mod HW]; out-of-image positions are zeroed
            # by the tap mask afterwards, so the circular wrap is harmless.
            s = (-delta) % HW
            if s == 0:
                return a
            return jnp.concatenate([a[:, HW - s:], a[:, :HW - s]], axis=1)

        act = x_ref[0].astype(jnp.float32)                  # (C, HW): 2 dense vregs
        for l in range(L):                                   # whole layer chain in-kernel
            acc = None
            for ky in range(3):
                for kx in range(3):
                    dy, dx = ky - 1, kx - 1
                    if dy == 0 and dx == 0:
                        tap = act                            # center tap: no shift/mask
                    else:
                        shifted = shift_flat(act, dy * W + dx)
                        tap = shifted * m_ref[ky * 3 + kx]   # (C, HW) * (1, HW)
                    wk = w_ref[l, ky, kx]                    # (C_out, C_in)
                    contrib = jnp.dot(wk, tap, preferred_element_type=jnp.float32)
                    acc = contrib if acc is None else acc + contrib
            act = acc + b_ref[l]                             # (C, HW) + (C, 1)
        o_ref[0] = act.astype(o_ref.dtype)

    flops = 2 * B * L * 9 * HW * C * C
    bytes_accessed = (2 * B * C * HW + L * 9 * C * C + L * C + 9 * HW) * 4

    out2 = pl.pallas_call(
        kernel,
        out_shape=jax.ShapeDtypeStruct((B, C, HW), x_nchw.dtype),
        grid=(B,),
        in_specs=[
            pl.BlockSpec((1, C, HW), lambda b: (b, 0, 0)),              # image (per batch)
            pl.BlockSpec((L, 3, 3, C, C), lambda b: (0, 0, 0, 0, 0)),   # full weight stack
            pl.BlockSpec((L, C, 1), lambda b: (0, 0, 0)),               # all biases
            pl.BlockSpec((9, 1, HW), lambda b: (0, 0, 0)),              # 9 tap masks
        ],
        out_specs=pl.BlockSpec((1, C, HW), lambda b: (b, 0, 0)),
        compiler_params=pltpu.CompilerParams(
            dimension_semantics=("parallel",),                # >= 2 steps -> both TCs on v7x
            vmem_limit_bytes=32 * 1024 * 1024,                # well under v7x's 64 MiB
        ),
        cost_estimate=pl.CostEstimate(
            flops=flops, transcendentals=0, bytes_accessed=bytes_accessed),
    )(x2, w_t, b2, masks)

    return out2.reshape(B, C, H, W)
    # TODO(synk): ICN.inverse uses self.conv.weight.inverse() on a 4-D tensor, which is
    # ill-defined in PyTorch itself; only forward is implemented here.


if __name__ == "__main__":
    key = jax.random.PRNGKey(0)
    B, C, H, W = 2, 4, 16, 16
    num_layers = 3

    k_x, k_w, k_b = jax.random.split(key, 3)
    x = jax.random.normal(k_x, (B, C, H, W), dtype=jnp.float32)

    # Deterministic synthetic parameters matching nn.Conv2d(C, C, 3, padding=1):
    # per-layer weight (C_out, C_in, 3, 3) in OIHW, ~kaiming scale, plus small bias.
    fan_in = C * 3 * 3
    weights = jax.random.normal(k_w, (num_layers, C, C, 3, 3), jnp.float32) / jnp.sqrt(fan_in)
    biases = jax.random.normal(k_b, (num_layers, C), jnp.float32) * 0.01

    out = icn_forward(x, weights, biases)
    out = jax.block_until_ready(out)

    # Pure-JAX reference (lax conv chain, NCHW/OIHW like nn.Conv2d) for correctness.
    ref = x
    for l in range(num_layers):
        ref = jax.lax.conv_general_dilated(
            ref, weights[l], window_strides=(1, 1), padding="SAME",
            dimension_numbers=("NCHW", "OIHW", "NCHW")) + biases[l][None, :, None, None]

    assert out.shape == (B, C, H, W)
    assert jnp.allclose(out, ref, atol=1e-4, rtol=1e-4), "mismatch vs reference conv chain"
    print("KERNEL_OK")
</pallas_src>

<mosaic_0001>
module attributes {stable_mosaic.version = 11 : i64} {
  func.func @kernel(%arg0: i32, %arg1: memref<1x4x256xf32, #tpu.memory_space<vmem>>, %arg2: memref<3x3x3x4x4xf32, #tpu.memory_space<vmem>>, %arg3: memref<3x4x1xf32, #tpu.memory_space<vmem>>, %arg4: memref<9x1x256xf32, #tpu.memory_space<vmem>>, %arg5: memref<1x4x256xf32, #tpu.memory_space<vmem>>) attributes {dimension_semantics = [#tpu.dimension_semantics<parallel>], iteration_bounds = array<i64: 2>, scalar_prefetch = 0 : i64, scratch_operands = 0 : i64, tpu.core_type = #tpu.core_type<tc>, window_params = [{transform_indices = @transform_0, window_bounds = array<i64: 1, 4, 256>}, {pipeline_mode = #tpu.pipeline_mode<synchronous>, transform_indices = @transform_1, window_bounds = array<i64: 3, 3, 3, 4, 4>}, {pipeline_mode = #tpu.pipeline_mode<synchronous>, transform_indices = @transform_2, window_bounds = array<i64: 3, 4, 1>}, {pipeline_mode = #tpu.pipeline_mode<synchronous>, transform_indices = @transform_3, window_bounds = array<i64: 9, 1, 256>}, {transform_indices = @transform_4, window_bounds = array<i64: 1, 4, 256>}]} {
    %c0 = arith.constant 0 : index
    %c0_0 = arith.constant 0 : index
    %c0_1 = arith.constant 0 : index
    %0 = vector.load %arg1[%c0, %c0_0, %c0_1] : memref<1x4x256xf32, #tpu.memory_space<vmem>>, vector<1x4x256xf32>
    %1 = vector.shape_cast %0 : vector<1x4x256xf32> to vector<4x256xf32>
    %2 = vector.extract_strided_slice %1 {offsets = [0, 239], sizes = [4, 17], strides = [1, 1]} : vector<4x256xf32> to vector<4x17xf32>
    %3 = vector.extract_strided_slice %1 {offsets = [0, 0], sizes = [4, 239], strides = [1, 1]} : vector<4x256xf32> to vector<4x239xf32>
    %4 = tpu.concatenate %2, %3 in 1 : vector<4x17xf32>, vector<4x239xf32> -> vector<4x256xf32>
    %c0_2 = arith.constant 0 : index
    %c0_3 = arith.constant 0 : index
    %c0_4 = arith.constant 0 : index
    %5 = vector.load %arg4[%c0_2, %c0_3, %c0_4] : memref<9x1x256xf32, #tpu.memory_space<vmem>>, vector<1x1x256xf32>
    %6 = vector.shape_cast %5 : vector<1x1x256xf32> to vector<1x256xf32>
    %7 = vector.broadcast %6 : vector<1x256xf32> to vector<4x256xf32>
    %8 = arith.mulf %4, %7 : vector<4x256xf32>
    %c0_5 = arith.constant 0 : index
    %c0_6 = arith.constant 0 : index
    %c0_7 = arith.constant 0 : index
    %c0_8 = arith.constant 0 : index
    %c0_9 = arith.constant 0 : index
    %9 = vector.load %arg2[%c0_5, %c0_6, %c0_7, %c0_8, %c0_9] : memref<3x3x3x4x4xf32, #tpu.memory_space<vmem>>, vector<1x1x1x4x4xf32>
    %10 = vector.shape_cast %9 : vector<1x1x1x4x4xf32> to vector<4x4xf32>
    %cst = arith.constant dense<0.000000e+00> : vector<4x256xf32>
    %11 = tpu.matmul %10, %8, %cst {dimension_numbers = #tpu.dot_dimension_numbers<[1], [0], [0], [1], [0, 0, 1, 1], [], []>} : vector<4x4xf32>, vector<4x256xf32>, vector<4x256xf32> -> vector<4x256xf32>
    %12 = vector.extract_strided_slice %1 {offsets = [0, 240], sizes = [4, 16], strides = [1, 1]} : vector<4x256xf32> to vector<4x16xf32>
    %13 = vector.extract_strided_slice %1 {offsets = [0, 0], sizes = [4, 240], strides = [1, 1]} : vector<4x256xf32> to vector<4x240xf32>
    %14 = tpu.concatenate %12, %13 in 1 : vector<4x16xf32>, vector<4x240xf32> -> vector<4x256xf32>
    %c1 = arith.constant 1 : index
    %c0_10 = arith.constant 0 : index
    %c0_11 = arith.constant 0 : index
    %15 = vector.load %arg4[%c1, %c0_10, %c0_11] : memref<9x1x256xf32, #tpu.memory_space<vmem>>, vector<1x1x256xf32>
    %16 = vector.shape_cast %15 : vector<1x1x256xf32> to vector<1x256xf32>
    %17 = vector.broadcast %16 : vector<1x256xf32> to vector<4x256xf32>
    %18 = arith.mulf %14, %17 : vector<4x256xf32>
    %c0_12 = arith.constant 0 : index
    %c0_13 = arith.constant 0 : index
    %c1_14 = arith.constant 1 : index
    %c0_15 = arith.constant 0 : index
    %c0_16 = arith.constant 0 : index
    %19 = vector.load %arg2[%c0_12, %c0_13, %c1_14, %c0_15, %c0_16] : memref<3x3x3x4x4xf32, #tpu.memory_space<vmem>>, vector<1x1x1x4x4xf32>
    %20 = vector.shape_cast %19 : vector<1x1x1x4x4xf32> to vector<4x4xf32>
    %cst_17 = arith.constant dense<0.000000e+00> : vector<4x256xf32>
    %21 = tpu.matmul %20, %18, %cst_17 {dimension_numbers = #tpu.dot_dimension_numbers<[1], [0], [0], [1], [0, 0, 1, 1], [], []>} : vector<4x4xf32>, vector<4x256xf32>, vector<4x256xf32> -> vector<4x256xf32>
    %22 = arith.addf %11, %21 : vector<4x256xf32>
    %23 = vector.extract_strided_slice %1 {offsets = [0, 241], sizes = [4, 15], strides = [1, 1]} : vector<4x256xf32> to vector<4x15xf32>
    %24 = vector.extract_strided_slice %1 {offsets = [0, 0], sizes = [4, 241], strides = [1, 1]} : vector<4x256xf32> to vector<4x241xf32>
    %25 = tpu.concatenate %23, %24 in 1 : vector<4x15xf32>, vector<4x241xf32> -> vector<4x256xf32>
    %c2 = arith.constant 2 : index
    %c0_18 = arith.constant 0 : index
    %c0_19 = arith.constant 0 : index
    %26 = vector.load %arg4[%c2, %c0_18, %c0_19] : memref<9x1x256xf32, #tpu.memory_space<vmem>>, vector<1x1x256xf32>
    %27 = vector.shape_cast %26 : vector<1x1x256xf32> to vector<1x256xf32>
    %28 = vector.broadcast %27 : vector<1x256xf32> to vector<4x256xf32>
    %29 = arith.mulf %25, %28 : vector<4x256xf32>
    %c0_20 = arith.constant 0 : index
    %c0_21 = arith.constant 0 : index
    %c2_22 = arith.constant 2 : index
    %c0_23 = arith.constant 0 : index
    %c0_24 = arith.constant 0 : index
    %30 = vector.load %arg2[%c0_20, %c0_21, %c2_22, %c0_23, %c0_24] : memref<3x3x3x4x4xf32, #tpu.memory_space<vmem>>, vector<1x1x1x4x4xf32>
    %31 = vector.shape_cast %30 : vector<1x1x1x4x4xf32> to vector<4x4xf32>
    %cst_25 = arith.constant dense<0.000000e+00> : vector<4x256xf32>
    %32 = tpu.matmul %31, %29, %cst_25 {dimension_numbers = #tpu.dot_dimension_numbers<[1], [0], [0], [1], [0, 0, 1, 1], [], []>} : vector<4x4xf32>, vector<4x256xf32>, vector<4x256xf32> -> vector<4x256xf32>
    %33 = arith.addf %22, %32 : vector<4x256xf32>
    %34 = vector.extract_strided_slice %1 {offsets = [0, 255], sizes = [4, 1], strides = [1, 1]} : vector<4x256xf32> to vector<4x1xf32>
    %35 = vector.extract_strided_slice %1 {offsets = [0, 0], sizes = [4, 255], strides = [1, 1]} : vector<4x256xf32> to vector<4x255xf32>
    %36 = tpu.concatenate %34, %35 in 1 : vector<4x1xf32>, vector<4x255xf32> -> vector<4x256xf32>
    %c3 = arith.constant 3 : index
    %c0_26 = arith.constant 0 : index
    %c0_27 = arith.constant 0 : index
    %37 = vector.load %arg4[%c3, %c0_26, %c0_27] : memref<9x1x256xf32, #tpu.memory_space<vmem>>, vector<1x1x256xf32>
    %38 = vector.shape_cast %37 : vector<1x1x256xf32> to vector<1x256xf32>
    %39 = vector.broadcast %38 : vector<1x256xf32> to vector<4x256xf32>
    %40 = arith.mulf %36, %39 : vector<4x256xf32>
    %c0_28 = arith.constant 0 : index
    %c1_29 = arith.constant 1 : index
    %c0_30 = arith.constant 0 : index
    %c0_31 = arith.constant 0 : index
    %c0_32 = arith.constant 0 : index
    %41 = vector.load %arg2[%c0_28, %c1_29, %c0_30, %c0_31, %c0_32] : memref<3x3x3x4x4xf32, #tpu.memory_space<vmem>>, vector<1x1x1x4x4xf32>
    %42 = vector.shape_cast %41 : vector<1x1x1x4x4xf32> to vector<4x4xf32>
    %cst_33 = arith.constant dense<0.000000e+00> : vector<4x256xf32>
    %43 = tpu.matmul %42, %40, %cst_33 {dimension_numbers = #tpu.dot_dimension_numbers<[1], [0], [0], [1], [0, 0, 1, 1], [], []>} : vector<4x4xf32>, vector<4x256xf32>, vector<4x256xf32> -> vector<4x256xf32>
    %44 = arith.addf %33, %43 : vector<4x256xf32>
    %c0_34 = arith.constant 0 : index
    %c1_35 = arith.constant 1 : index
    %c1_36 = arith.constant 1 : index
    %c0_37 = arith.constant 0 : index
    %c0_38 = arith.constant 0 : index
    %45 = vector.load %arg2[%c0_34, %c1_35, %c1_36, %c0_37, %c0_38] : memref<3x3x3x4x4xf32, #tpu.memory_space<vmem>>, vector<1x1x1x4x4xf32>
    %46 = vector.shape_cast %45 : vector<1x1x1x4x4xf32> to vector<4x4xf32>
    %cst_39 = arith.constant dense<0.000000e+00> : vector<4x256xf32>
    %47 = tpu.matmul %46, %1, %cst_39 {dimension_numbers = #tpu.dot_dimension_numbers<[1], [0], [0], [1], [0, 0, 1, 1], [], []>} : vector<4x4xf32>, vector<4x256xf32>, vector<4x256xf32> -> vector<4x256xf32>
    %48 = arith.addf %44, %47 : vector<4x256xf32>
    %49 = vector.extract_strided_slice %1 {offsets = [0, 1], sizes = [4, 255], strides = [1, 1]} : vector<4x256xf32> to vector<4x255xf32>
    %50 = vector.extract_strided_slice %1 {offsets = [0, 0], sizes = [4, 1], strides = [1, 1]} : vector<4x256xf32> to vector<4x1xf32>
    %51 = tpu.concatenate %49, %50 in 1 : vector<4x255xf32>, vector<4x1xf32> -> vector<4x256xf32>
    %c5 = arith.constant 5 : index
    %c0_40 = arith.constant 0 : index
    %c0_41 = arith.constant 0 : index
    %52 = vector.load %arg4[%c5, %c0_40, %c0_41] : memref<9x1x256xf32, #tpu.memory_space<vmem>>, vector<1x1x256xf32>
    %53 = vector.shape_cast %52 : vector<1x1x256xf32> to vector<1x256xf32>
    %54 = vector.broadcast %53 : vector<1x256xf32> to vector<4x256xf32>
    %55 = arith.mulf %51, %54 : vector<4x256xf32>
    %c0_42 = arith.constant 0 : index
    %c1_43 = arith.constant 1 : index
    %c2_44 = arith.constant 2 : index
    %c0_45 = arith.constant 0 : index
    %c0_46 = arith.constant 0 : index
    %56 = vector.load %arg2[%c0_42, %c1_43, %c2_44, %c0_45, %c0_46] : memref<3x3x3x4x4xf32, #tpu.memory_space<vmem>>, vector<1x1x1x4x4xf32>
    %57 = vector.shape_cast %56 : vector<1x1x1x4x4xf32> to vector<4x4xf32>
    %cst_47 = arith.constant dense<0.000000e+00> : vector<4x256xf32>
    %58 = tpu.matmul %57, %55, %cst_47 {dimension_numbers = #tpu.dot_dimension_numbers<[1], [0], [0], [1], [0, 0, 1, 1], [], []>} : vector<4x4xf32>, vector<4x256xf32>, vector<4x256xf32> -> vector<4x256xf32>
    %59 = arith.addf %48, %58 : vector<4x256xf32>
    %60 = vector.extract_strided_slice %1 {offsets = [0, 15], sizes = [4, 241], strides = [1, 1]} : vector<4x256xf32> to vector<4x241xf32>
    %61 = vector.extract_strided_slice %1 {offsets = [0, 0], sizes = [4, 15], strides = [1, 1]} : vector<4x256xf32> to vector<4x15xf32>
    %62 = tpu.concatenate %60, %61 in 1 : vector<4x241xf32>, vector<4x15xf32> -> vector<4x256xf32>
    %c6 = arith.constant 6 : index
    %c0_48 = arith.constant 0 : index
    %c0_49 = arith.constant 0 : index
    %63 = vector.load %arg4[%c6, %c0_48, %c0_49] : memref<9x1x256xf32, #tpu.memory_space<vmem>>, vector<1x1x256xf32>
    %64 = vector.shape_cast %63 : vector<1x1x256xf32> to vector<1x256xf32>
    %65 = vector.broadcast %64 : vector<1x256xf32> to vector<4x256xf32>
    %66 = arith.mulf %62, %65 : vector<4x256xf32>
    %c0_50 = arith.constant 0 : index
    %c2_51 = arith.constant 2 : index
    %c0_52 = arith.constant 0 : index
    %c0_53 = arith.constant 0 : index
    %c0_54 = arith.constant 0 : index
    %67 = vector.load %arg2[%c0_50, %c2_51, %c0_52, %c0_53, %c0_54] : memref<3x3x3x4x4xf32, #tpu.memory_space<vmem>>, vector<1x1x1x4x4xf32>
    %68 = vector.shape_cast %67 : vector<1x1x1x4x4xf32> to vector<4x4xf32>
    %cst_55 = arith.constant dense<0.000000e+00> : vector<4x256xf32>
    %69 = tpu.matmul %68, %66, %cst_55 {dimension_numbers = #tpu.dot_dimension_numbers<[1], [0], [0], [1], [0, 0, 1, 1], [], []>} : vector<4x4xf32>, vector<4x256xf32>, vector<4x256xf32> -> vector<4x256xf32>
    %70 = arith.addf %59, %69 : vector<4x256xf32>
    %71 = vector.extract_strided_slice %1 {offsets = [0, 16], sizes = [4, 240], strides = [1, 1]} : vector<4x256xf32> to vector<4x240xf32>
    %72 = vector.extract_strided_slice %1 {offsets = [0, 0], sizes = [4, 16], strides = [1, 1]} : vector<4x256xf32> to vector<4x16xf32>
    %73 = tpu.concatenate %71, %72 in 1 : vector<4x240xf32>, vector<4x16xf32> -> vector<4x256xf32>
    %c7 = arith.constant 7 : index
    %c0_56 = arith.constant 0 : index
    %c0_57 = arith.constant 0 : index
    %74 = vector.load %arg4[%c7, %c0_56, %c0_57] : memref<9x1x256xf32, #tpu.memory_space<vmem>>, vector<1x1x256xf32>
    %75 = vector.shape_cast %74 : vector<1x1x256xf32> to vector<1x256xf32>
    %76 = vector.broadcast %75 : vector<1x256xf32> to vector<4x256xf32>
    %77 = arith.mulf %73, %76 : vector<4x256xf32>
    %c0_58 = arith.constant 0 : index
    %c2_59 = arith.constant 2 : index
    %c1_60 = arith.constant 1 : index
    %c0_61 = arith.constant 0 : index
    %c0_62 = arith.constant 0 : index
    %78 = vector.load %arg2[%c0_58, %c2_59, %c1_60, %c0_61, %c0_62] : memref<3x3x3x4x4xf32, #tpu.memory_space<vmem>>, vector<1x1x1x4x4xf32>
    %79 = vector.shape_cast %78 : vector<1x1x1x4x4xf32> to vector<4x4xf32>
    %cst_63 = arith.constant dense<0.000000e+00> : vector<4x256xf32>
    %80 = tpu.matmul %79, %77, %cst_63 {dimension_numbers = #tpu.dot_dimension_numbers<[1], [0], [0], [1], [0, 0, 1, 1], [], []>} : vector<4x4xf32>, vector<4x256xf32>, vector<4x256xf32> -> vector<4x256xf32>
    %81 = arith.addf %70, %80 : vector<4x256xf32>
    %82 = vector.extract_strided_slice %1 {offsets = [0, 17], sizes = [4, 239], strides = [1, 1]} : vector<4x256xf32> to vector<4x239xf32>
    %83 = vector.extract_strided_slice %1 {offsets = [0, 0], sizes = [4, 17], strides = [1, 1]} : vector<4x256xf32> to vector<4x17xf32>
    %84 = tpu.concatenate %82, %83 in 1 : vector<4x239xf32>, vector<4x17xf32> -> vector<4x256xf32>
    %c8 = arith.constant 8 : index
    %c0_64 = arith.constant 0 : index
    %c0_65 = arith.constant 0 : index
    %85 = vector.load %arg4[%c8, %c0_64, %c0_65] : memref<9x1x256xf32, #tpu.memory_space<vmem>>, vector<1x1x256xf32>
    %86 = vector.shape_cast %85 : vector<1x1x256xf32> to vector<1x256xf32>
    %87 = vector.broadcast %86 : vector<1x256xf32> to vector<4x256xf32>
    %88 = arith.mulf %84, %87 : vector<4x256xf32>
    %c0_66 = arith.constant 0 : index
    %c2_67 = arith.constant 2 : index
    %c2_68 = arith.constant 2 : index
    %c0_69 = arith.constant 0 : index
    %c0_70 = arith.constant 0 : index
    %89 = vector.load %arg2[%c0_66, %c2_67, %c2_68, %c0_69, %c0_70] : memref<3x3x3x4x4xf32, #tpu.memory_space<vmem>>, vector<1x1x1x4x4xf32>
    %90 = vector.shape_cast %89 : vector<1x1x1x4x4xf32> to vector<4x4xf32>
    %cst_71 = arith.constant dense<0.000000e+00> : vector<4x256xf32>
    %91 = tpu.matmul %90, %88, %cst_71 {dimension_numbers = #tpu.dot_dimension_numbers<[1], [0], [0], [1], [0, 0, 1, 1], [], []>} : vector<4x4xf32>, vector<4x256xf32>, vector<4x256xf32> -> vector<4x256xf32>
    %92 = arith.addf %81, %91 : vector<4x256xf32>
    %c0_72 = arith.constant 0 : index
    %c0_73 = arith.constant 0 : index
    %c0_74 = arith.constant 0 : index
    %93 = vector.load %arg3[%c0_72, %c0_73, %c0_74] : memref<3x4x1xf32, #tpu.memory_space<vmem>>, vector<1x4x1xf32>
    %94 = vector.shape_cast %93 : vector<1x4x1xf32> to vector<4x1xf32>
    %95 = vector.broadcast %94 : vector<4x1xf32> to vector<4x256xf32>
    %96 = arith.addf %92, %95 : vector<4x256xf32>
    %97 = vector.extract_strided_slice %96 {offsets = [0, 239], sizes = [4, 17], strides = [1, 1]} : vector<4x256xf32> to vector<4x17xf32>
    %98 = vector.extract_strided_slice %96 {offsets = [0, 0], sizes = [4, 239], strides = [1, 1]} : vector<4x256xf32> to vector<4x239xf32>
    %99 = tpu.concatenate %97, %98 in 1 : vector<4x17xf32>, vector<4x239xf32> -> vector<4x256xf32>
    %c0_75 = arith.constant 0 : index
    %c0_76 = arith.constant 0 : index
    %c0_77 = arith.constant 0 : index
    %100 = vector.load %arg4[%c0_75, %c0_76, %c0_77] : memref<9x1x256xf32, #tpu.memory_space<vmem>>, vector<1x1x256xf32>
    %101 = vector.shape_cast %100 : vector<1x1x256xf32> to vector<1x256xf32>
    %102 = vector.broadcast %101 : vector<1x256xf32> to vector<4x256xf32>
    %103 = arith.mulf %99, %102 : vector<4x256xf32>
    %c1_78 = arith.constant 1 : index
    %c0_79 = arith.constant 0 : index
    %c0_80 = arith.constant 0 : index
    %c0_81 = arith.constant 0 : index
    %c0_82 = arith.constant 0 : index
    %104 = vector.load %arg2[%c1_78, %c0_79, %c0_80, %c0_81, %c0_82] : memref<3x3x3x4x4xf32, #tpu.memory_space<vmem>>, vector<1x1x1x4x4xf32>
    %105 = vector.shape_cast %104 : vector<1x1x1x4x4xf32> to vector<4x4xf32>
    %cst_83 = arith.constant dense<0.000000e+00> : vector<4x256xf32>
    %106 = tpu.matmul %105, %103, %cst_83 {dimension_numbers = #tpu.dot_dimension_numbers<[1], [0], [0], [1], [0, 0, 1, 1], [], []>} : vector<4x4xf32>, vector<4x256xf32>, vector<4x256xf32> -> vector<4x256xf32>
    %107 = vector.extract_strided_slice %96 {offsets = [0, 240], sizes = [4, 16], strides = [1, 1]} : vector<4x256xf32> to vector<4x16xf32>
    %108 = vector.extract_strided_slice %96 {offsets = [0, 0], sizes = [4, 240], strides = [1, 1]} : vector<4x256xf32> to vector<4x240xf32>
    %109 = tpu.concatenate %107, %108 in 1 : vector<4x16xf32>, vector<4x240xf32> -> vector<4x256xf32>
    %c1_84 = arith.constant 1 : index
    %c0_85 = arith.constant 0 : index
    %c0_86 = arith.constant 0 : index
    %110 = vector.load %arg4[%c1_84, %c0_85, %c0_86] : memref<9x1x256xf32, #tpu.memory_space<vmem>>, vector<1x1x256xf32>
    %111 = vector.shape_cast %110 : vector<1x1x256xf32> to vector<1x256xf32>
    %112 = vector.broadcast %111 : vector<1x256xf32> to vector<4x256xf32>
    %113 = arith.mulf %109, %112 : vector<4x256xf32>
    %c1_87 = arith.constant 1 : index
    %c0_88 = arith.constant 0 : index
    %c1_89 = arith.constant 1 : index
    %c0_90 = arith.constant 0 : index
    %c0_91 = arith.constant 0 : index
    %114 = vector.load %arg2[%c1_87, %c0_88, %c1_89, %c0_90, %c0_91] : memref<3x3x3x4x4xf32, #tpu.memory_space<vmem>>, vector<1x1x1x4x4xf32>
    %115 = vector.shape_cast %114 : vector<1x1x1x4x4xf32> to vector<4x4xf32>
    %cst_92 = arith.constant dense<0.000000e+00> : vector<4x256xf32>
    %116 = tpu.matmul %115, %113, %cst_92 {dimension_numbers = #tpu.dot_dimension_numbers<[1], [0], [0], [1], [0, 0, 1, 1], [], []>} : vector<4x4xf32>, vector<4x256xf32>, vector<4x256xf32> -> vector<4x256xf32>
    %117 = arith.addf %106, %116 : vector<4x256xf32>
    %118 = vector.extract_strided_slice %96 {offsets = [0, 241], sizes = [4, 15], strides = [1, 1]} : vector<4x256xf32> to vector<4x15xf32>
    %119 = vector.extract_strided_slice %96 {offsets = [0, 0], sizes = [4, 241], strides = [1, 1]} : vector<4x256xf32> to vector<4x241xf32>
    %120 = tpu.concatenate %118, %119 in 1 : vector<4x15xf32>, vector<4x241xf32> -> vector<4x256xf32>
    %c2_93 = arith.constant 2 : index
    %c0_94 = arith.constant 0 : index
    %c0_95 = arith.constant 0 : index
    %121 = vector.load %arg4[%c2_93, %c0_94, %c0_95] : memref<9x1x256xf32, #tpu.memory_space<vmem>>, vector<1x1x256xf32>
    %122 = vector.shape_cast %121 : vector<1x1x256xf32> to vector<1x256xf32>
    %123 = vector.broadcast %122 : vector<1x256xf32> to vector<4x256xf32>
    %124 = arith.mulf %120, %123 : vector<4x256xf32>
    %c1_96 = arith.constant 1 : index
    %c0_97 = arith.constant 0 : index
    %c2_98 = arith.constant 2 : index
    %c0_99 = arith.constant 0 : index
    %c0_100 = arith.constant 0 : index
    %125 = vector.load %arg2[%c1_96, %c0_97, %c2_98, %c0_99, %c0_100] : memref<3x3x3x4x4xf32, #tpu.memory_space<vmem>>, vector<1x1x1x4x4xf32>
    %126 = vector.shape_cast %125 : vector<1x1x1x4x4xf32> to vector<4x4xf32>
    %cst_101 = arith.constant dense<0.000000e+00> : vector<4x256xf32>
    %127 = tpu.matmul %126, %124, %cst_101 {dimension_numbers = #tpu.dot_dimension_numbers<[1], [0], [0], [1], [0, 0, 1, 1], [], []>} : vector<4x4xf32>, vector<4x256xf32>, vector<4x256xf32> -> vector<4x256xf32>
    %128 = arith.addf %117, %127 : vector<4x256xf32>
    %129 = vector.extract_strided_slice %96 {offsets = [0, 255], sizes = [4, 1], strides = [1, 1]} : vector<4x256xf32> to vector<4x1xf32>
    %130 = vector.extract_strided_slice %96 {offsets = [0, 0], sizes = [4, 255], strides = [1, 1]} : vector<4x256xf32> to vector<4x255xf32>
    %131 = tpu.concatenate %129, %130 in 1 : vector<4x1xf32>, vector<4x255xf32> -> vector<4x256xf32>
    %c3_102 = arith.constant 3 : index
    %c0_103 = arith.constant 0 : index
    %c0_104 = arith.constant 0 : index
    %132 = vector.load %arg4[%c3_102, %c0_103, %c0_104] : memref<9x1x256xf32, #tpu.memory_space<vmem>>, vector<1x1x256xf32>
    %133 = vector.shape_cast %132 : vector<1x1x256xf32> to vector<1x256xf32>
    %134 = vector.broadcast %133 : vector<1x256xf32> to vector<4x256xf32>
    %135 = arith.mulf %131, %134 : vector<4x256xf32>
    %c1_105 = arith.constant 1 : index
    %c1_106 = arith.constant 1 : index
    %c0_107 = arith.constant 0 : index
    %c0_108 = arith.constant 0 : index
    %c0_109 = arith.constant 0 : index
    %136 = vector.load %arg2[%c1_105, %c1_106, %c0_107, %c0_108, %c0_109] : memref<3x3x3x4x4xf32, #tpu.memory_space<vmem>>, vector<1x1x1x4x4xf32>
    %137 = vector.shape_cast %136 : vector<1x1x1x4x4xf32> to vector<4x4xf32>
    %cst_110 = arith.constant dense<0.000000e+00> : vector<4x256xf32>
    %138 = tpu.matmul %137, %135, %cst_110 {dimension_numbers = #tpu.dot_dimension_numbers<[1], [0], [0], [1], [0, 0, 1, 1], [], []>} : vector<4x4xf32>, vector<4x256xf32>, vector<4x256xf32> -> vector<4x256xf32>
    %139 = arith.addf %128, %138 : vector<4x256xf32>
    %c1_111 = arith.constant 1 : index
    %c1_112 = arith.constant 1 : index
    %c1_113 = arith.constant 1 : index
    %c0_114 = arith.constant 0 : index
    %c0_115 = arith.constant 0 : index
    %140 = vector.load %arg2[%c1_111, %c1_112, %c1_113, %c0_114, %c0_115] : memref<3x3x3x4x4xf32, #tpu.memory_space<vmem>>, vector<1x1x1x4x4xf32>
    %141 = vector.shape_cast %140 : vector<1x1x1x4x4xf32> to vector<4x4xf32>
    %cst_116 = arith.constant dense<0.000000e+00> : vector<4x256xf32>
    %142 = tpu.matmul %141, %96, %cst_116 {dimension_numbers = #tpu.dot_dimension_numbers<[1], [0], [0], [1], [0, 0, 1, 1], [], []>} : vector<4x4xf32>, vector<4x256xf32>, vector<4x256xf32> -> vector<4x256xf32>
    %143 = arith.addf %139, %142 : vector<4x256xf32>
    %144 = vector.extract_strided_slice %96 {offsets = [0, 1], sizes = [4, 255], strides = [1, 1]} : vector<4x256xf32> to vector<4x255xf32>
    %145 = vector.extract_strided_slice %96 {offsets = [0, 0], sizes = [4, 1], strides = [1, 1]} : vector<4x256xf32> to vector<4x1xf32>
    %146 = tpu.concatenate %144, %145 in 1 : vector<4x255xf32>, vector<4x1xf32> -> vector<4x256xf32>
    %c5_117 = arith.constant 5 : index
    %c0_118 = arith.constant 0 : index
    %c0_119 = arith.constant 0 : index
    %147 = vector.load %arg4[%c5_117, %c0_118, %c0_119] : memref<9x1x256xf32, #tpu.memory_space<vmem>>, vector<1x1x256xf32>
    %148 = vector.shape_cast %147 : vector<1x1x256xf32> to vector<1x256xf32>
    %149 = vector.broadcast %148 : vector<1x256xf32> to vector<4x256xf32>
    %150 = arith.mulf %146, %149 : vector<4x256xf32>
    %c1_120 = arith.constant 1 : index
    %c1_121 = arith.constant 1 : index
    %c2_122 = arith.constant 2 : index
    %c0_123 = arith.constant 0 : index
    %c0_124 = arith.constant 0 : index
    %151 = vector.load %arg2[%c1_120, %c1_121, %c2_122, %c0_123, %c0_124] : memref<3x3x3x4x4xf32, #tpu.memory_space<vmem>>, vector<1x1x1x4x4xf32>
    %152 = vector.shape_cast %151 : vector<1x1x1x4x4xf32> to vector<4x4xf32>
    %cst_125 = arith.constant dense<0.000000e+00> : vector<4x256xf32>
    %153 = tpu.matmul %152, %150, %cst_125 {dimension_numbers = #tpu.dot_dimension_numbers<[1], [0], [0], [1], [0, 0, 1, 1], [], []>} : vector<4x4xf32>, vector<4x256xf32>, vector<4x256xf32> -> vector<4x256xf32>
    %154 = arith.addf %143, %153 : vector<4x256xf32>
    %155 = vector.extract_strided_slice %96 {offsets = [0, 15], sizes = [4, 241], strides = [1, 1]} : vector<4x256xf32> to vector<4x241xf32>
    %156 = vector.extract_strided_slice %96 {offsets = [0, 0], sizes = [4, 15], strides = [1, 1]} : vector<4x256xf32> to vector<4x15xf32>
    %157 = tpu.concatenate %155, %156 in 1 : vector<4x241xf32>, vector<4x15xf32> -> vector<4x256xf32>
    %c6_126 = arith.constant 6 : index
    %c0_127 = arith.constant 0 : index
    %c0_128 = arith.constant 0 : index
    %158 = vector.load %arg4[%c6_126, %c0_127, %c0_128] : memref<9x1x256xf32, #tpu.memory_space<vmem>>, vector<1x1x256xf32>
    %159 = vector.shape_cast %158 : vector<1x1x256xf32> to vector<1x256xf32>
    %160 = vector.broadcast %159 : vector<1x256xf32> to vector<4x256xf32>
    %161 = arith.mulf %157, %160 : vector<4x256xf32>
    %c1_129 = arith.constant 1 : index
    %c2_130 = arith.constant 2 : index
    %c0_131 = arith.constant 0 : index
    %c0_132 = arith.constant 0 : index
    %c0_133 = arith.constant 0 : index
    %162 = vector.load %arg2[%c1_129, %c2_130, %c0_131, %c0_132, %c0_133] : memref<3x3x3x4x4xf32, #tpu.memory_space<vmem>>, vector<1x1x1x4x4xf32>
    %163 = vector.shape_cast %162 : vector<1x1x1x4x4xf32> to vector<4x4xf32>
    %cst_134 = arith.constant dense<0.000000e+00> : vector<4x256xf32>
    %164 = tpu.matmul %163, %161, %cst_134 {dimension_numbers = #tpu.dot_dimension_numbers<[1], [0], [0], [1], [0, 0, 1, 1], [], []>} : vector<4x4xf32>, vector<4x256xf32>, vector<4x256xf32> -> vector<4x256xf32>
    %165 = arith.addf %154, %164 : vector<4x256xf32>
    %166 = vector.extract_strided_slice %96 {offsets = [0, 16], sizes = [4, 240], strides = [1, 1]} : vector<4x256xf32> to vector<4x240xf32>
    %167 = vector.extract_strided_slice %96 {offsets = [0, 0], sizes = [4, 16], strides = [1, 1]} : vector<4x256xf32> to vector<4x16xf32>
    %168 = tpu.concatenate %166, %167 in 1 : vector<4x240xf32>, vector<4x16xf32> -> vector<4x256xf32>
    %c7_135 = arith.constant 7 : index
    %c0_136 = arith.constant 0 : index
    %c0_137 = arith.constant 0 : index
    %169 = vector.load %arg4[%c7_135, %c0_136, %c0_137] : memref<9x1x256xf32, #tpu.memory_space<vmem>>, vector<1x1x256xf32>
    %170 = vector.shape_cast %169 : vector<1x1x256xf32> to vector<1x256xf32>
    %171 = vector.broadcast %170 : vector<1x256xf32> to vector<4x256xf32>
    %172 = arith.mulf %168, %171 : vector<4x256xf32>
    %c1_138 = arith.constant 1 : index
    %c2_139 = arith.constant 2 : index
    %c1_140 = arith.constant 1 : index
    %c0_141 = arith.constant 0 : index
    %c0_142 = arith.constant 0 : index
    %173 = vector.load %arg2[%c1_138, %c2_139, %c1_140, %c0_141, %c0_142] : memref<3x3x3x4x4xf32, #tpu.memory_space<vmem>>, vector<1x1x1x4x4xf32>
    %174 = vector.shape_cast %173 : vector<1x1x1x4x4xf32> to vector<4x4xf32>
    %cst_143 = arith.constant dense<0.000000e+00> : vector<4x256xf32>
    %175 = tpu.matmul %174, %172, %cst_143 {dimension_numbers = #tpu.dot_dimension_numbers<[1], [0], [0], [1], [0, 0, 1, 1], [], []>} : vector<4x4xf32>, vector<4x256xf32>, vector<4x256xf32> -> vector<4x256xf32>
    %176 = arith.addf %165, %175 : vector<4x256xf32>
    %177 = vector.extract_strided_slice %96 {offsets = [0, 17], sizes = [4, 239], strides = [1, 1]} : vector<4x256xf32> to vector<4x239xf32>
    %178 = vector.extract_strided_slice %96 {offsets = [0, 0], sizes = [4, 17], strides = [1, 1]} : vector<4x256xf32> to vector<4x17xf32>
    %179 = tpu.concatenate %177, %178 in 1 : vector<4x239xf32>, vector<4x17xf32> -> vector<4x256xf32>
    %c8_144 = arith.constant 8 : index
    %c0_145 = arith.constant 0 : index
    %c0_146 = arith.constant 0 : index
    %180 = vector.load %arg4[%c8_144, %c0_145, %c0_146] : memref<9x1x256xf32, #tpu.memory_space<vmem>>, vector<1x1x256xf32>
    %181 = vector.shape_cast %180 : vector<1x1x256xf32> to vector<1x256xf32>
    %182 = vector.broadcast %181 : vector<1x256xf32> to vector<4x256xf32>
    %183 = arith.mulf %179, %182 : vector<4x256xf32>
    %c1_147 = arith.constant 1 : index
    %c2_148 = arith.constant 2 : index
    %c2_149 = arith.constant 2 : index
    %c0_150 = arith.constant 0 : index
    %c0_151 = arith.constant 0 : index
    %184 = vector.load %arg2[%c1_147, %c2_148, %c2_149, %c0_150, %c0_151] : memref<3x3x3x4x4xf32, #tpu.memory_space<vmem>>, vector<1x1x1x4x4xf32>
    %185 = vector.shape_cast %184 : vector<1x1x1x4x4xf32> to vector<4x4xf32>
    %cst_152 = arith.constant dense<0.000000e+00> : vector<4x256xf32>
    %186 = tpu.matmul %185, %183, %cst_152 {dimension_numbers = #tpu.dot_dimension_numbers<[1], [0], [0], [1], [0, 0, 1, 1], [], []>} : vector<4x4xf32>, vector<4x256xf32>, vector<4x256xf32> -> vector<4x256xf32>
    %187 = arith.addf %176, %186 : vector<4x256xf32>
    %c1_153 = arith.constant 1 : index
    %c0_154 = arith.constant 0 : index
    %c0_155 = arith.constant 0 : index
    %188 = vector.load %arg3[%c1_153, %c0_154, %c0_155] : memref<3x4x1xf32, #tpu.memory_space<vmem>>, vector<1x4x1xf32>
    %189 = vector.shape_cast %188 : vector<1x4x1xf32> to vector<4x1xf32>
    %190 = vector.broadcast %189 : vector<4x1xf32> to vector<4x256xf32>
    %191 = arith.addf %187, %190 : vector<4x256xf32>
    %192 = vector.extract_strided_slice %191 {offsets = [0, 239], sizes = [4, 17], strides = [1, 1]} : vector<4x256xf32> to vector<4x17xf32>
    %193 = vector.extract_strided_slice %191 {offsets = [0, 0], sizes = [4, 239], strides = [1, 1]} : vector<4x256xf32> to vector<4x239xf32>
    %194 = tpu.concatenate %192, %193 in 1 : vector<4x17xf32>, vector<4x239xf32> -> vector<4x256xf32>
    %c0_156 = arith.constant 0 : index
    %c0_157 = arith.constant 0 : index
    %c0_158 = arith.constant 0 : index
    %195 = vector.load %arg4[%c0_156, %c0_157, %c0_158] : memref<9x1x256xf32, #tpu.memory_space<vmem>>, vector<1x1x256xf32>
    %196 = vector.shape_cast %195 : vector<1x1x256xf32> to vector<1x256xf32>
    %197 = vector.broadcast %196 : vector<1x256xf32> to vector<4x256xf32>
    %198 = arith.mulf %194, %197 : vector<4x256xf32>
    %c2_159 = arith.constant 2 : index
    %c0_160 = arith.constant 0 : index
    %c0_161 = arith.constant 0 : index
    %c0_162 = arith.constant 0 : index
    %c0_163 = arith.constant 0 : index
    %199 = vector.load %arg2[%c2_159, %c0_160, %c0_161, %c0_162, %c0_163] : memref<3x3x3x4x4xf32, #tpu.memory_space<vmem>>, vector<1x1x1x4x4xf32>
    %200 = vector.shape_cast %199 : vector<1x1x1x4x4xf32> to vector<4x4xf32>
    %cst_164 = arith.constant dense<0.000000e+00> : vector<4x256xf32>
    %201 = tpu.matmul %200, %198, %cst_164 {dimension_numbers = #tpu.dot_dimension_numbers<[1], [0], [0], [1], [0, 0, 1, 1], [], []>} : vector<4x4xf32>, vector<4x256xf32>, vector<4x256xf32> -> vector<4x256xf32>
    %202 = vector.extract_strided_slice %191 {offsets = [0, 240], sizes = [4, 16], strides = [1, 1]} : vector<4x256xf32> to vector<4x16xf32>
    %203 = vector.extract_strided_slice %191 {offsets = [0, 0], sizes = [4, 240], strides = [1, 1]} : vector<4x256xf32> to vector<4x240xf32>
    %204 = tpu.concatenate %202, %203 in 1 : vector<4x16xf32>, vector<4x240xf32> -> vector<4x256xf32>
    %c1_165 = arith.constant 1 : index
    %c0_166 = arith.constant 0 : index
    %c0_167 = arith.constant 0 : index
    %205 = vector.load %arg4[%c1_165, %c0_166, %c0_167] : memref<9x1x256xf32, #tpu.memory_space<vmem>>, vector<1x1x256xf32>
    %206 = vector.shape_cast %205 : vector<1x1x256xf32> to vector<1x256xf32>
    %207 = vector.broadcast %206 : vector<1x256xf32> to vector<4x256xf32>
    %208 = arith.mulf %204, %207 : vector<4x256xf32>
    %c2_168 = arith.constant 2 : index
    %c0_169 = arith.constant 0 : index
    %c1_170 = arith.constant 1 : index
    %c0_171 = arith.constant 0 : index
    %c0_172 = arith.constant 0 : index
    %209 = vector.load %arg2[%c2_168, %c0_169, %c1_170, %c0_171, %c0_172] : memref<3x3x3x4x4xf32, #tpu.memory_space<vmem>>, vector<1x1x1x4x4xf32>
    %210 = vector.shape_cast %209 : vector<1x1x1x4x4xf32> to vector<4x4xf32>
    %cst_173 = arith.constant dense<0.000000e+00> : vector<4x256xf32>
    %211 = tpu.matmul %210, %208, %cst_173 {dimension_numbers = #tpu.dot_dimension_numbers<[1], [0], [0], [1], [0, 0, 1, 1], [], []>} : vector<4x4xf32>, vector<4x256xf32>, vector<4x256xf32> -> vector<4x256xf32>
    %212 = arith.addf %201, %211 : vector<4x256xf32>
    %213 = vector.extract_strided_slice %191 {offsets = [0, 241], sizes = [4, 15], strides = [1, 1]} : vector<4x256xf32> to vector<4x15xf32>
    %214 = vector.extract_strided_slice %191 {offsets = [0, 0], sizes = [4, 241], strides = [1, 1]} : vector<4x256xf32> to vector<4x241xf32>
    %215 = tpu.concatenate %213, %214 in 1 : vector<4x15xf32>, vector<4x241xf32> -> vector<4x256xf32>
    %c2_174 = arith.constant 2 : index
    %c0_175 = arith.constant 0 : index
    %c0_176 = arith.constant 0 : index
    %216 = vector.load %arg4[%c2_174, %c0_175, %c0_176] : memref<9x1x256xf32, #tpu.memory_space<vmem>>, vector<1x1x256xf32>
    %217 = vector.shape_cast %216 : vector<1x1x256xf32> to vector<1x256xf32>
    %218 = vector.broadcast %217 : vector<1x256xf32> to vector<4x256xf32>
    %219 = arith.mulf %215, %218 : vector<4x256xf32>
    %c2_177 = arith.constant 2 : index
    %c0_178 = arith.constant 0 : index
    %c2_179 = arith.constant 2 : index
    %c0_180 = arith.constant 0 : index
    %c0_181 = arith.constant 0 : index
    %220 = vector.load %arg2[%c2_177, %c0_178, %c2_179, %c0_180, %c0_181] : memref<3x3x3x4x4xf32, #tpu.memory_space<vmem>>, vector<1x1x1x4x4xf32>
    %221 = vector.shape_cast %220 : vector<1x1x1x4x4xf32> to vector<4x4xf32>
    %cst_182 = arith.constant dense<0.000000e+00> : vector<4x256xf32>
    %222 = tpu.matmul %221, %219, %cst_182 {dimension_numbers = #tpu.dot_dimension_numbers<[1], [0], [0], [1], [0, 0, 1, 1], [], []>} : vector<4x4xf32>, vector<4x256xf32>, vector<4x256xf32> -> vector<4x256xf32>
    %223 = arith.addf %212, %222 : vector<4x256xf32>
    %224 = vector.extract_strided_slice %191 {offsets = [0, 255], sizes = [4, 1], strides = [1, 1]} : vector<4x256xf32> to vector<4x1xf32>
    %225 = vector.extract_strided_slice %191 {offsets = [0, 0], sizes = [4, 255], strides = [1, 1]} : vector<4x256xf32> to vector<4x255xf32>
    %226 = tpu.concatenate %224, %225 in 1 : vector<4x1xf32>, vector<4x255xf32> -> vector<4x256xf32>
    %c3_183 = arith.constant 3 : index
    %c0_184 = arith.constant 0 : index
    %c0_185 = arith.constant 0 : index
    %227 = vector.load %arg4[%c3_183, %c0_184, %c0_185] : memref<9x1x256xf32, #tpu.memory_space<vmem>>, vector<1x1x256xf32>
    %228 = vector.shape_cast %227 : vector<1x1x256xf32> to vector<1x256xf32>
    %229 = vector.broadcast %228 : vector<1x256xf32> to vector<4x256xf32>
    %230 = arith.mulf %226, %229 : vector<4x256xf32>
    %c2_186 = arith.constant 2 : index
    %c1_187 = arith.constant 1 : index
    %c0_188 = arith.constant 0 : index
    %c0_189 = arith.constant 0 : index
    %c0_190 = arith.constant 0 : index
    %231 = vector.load %arg2[%c2_186, %c1_187, %c0_188, %c0_189, %c0_190] : memref<3x3x3x4x4xf32, #tpu.memory_space<vmem>>, vector<1x1x1x4x4xf32>
    %232 = vector.shape_cast %231 : vector<1x1x1x4x4xf32> to vector<4x4xf32>
    %cst_191 = arith.constant dense<0.000000e+00> : vector<4x256xf32>
    %233 = tpu.matmul %232, %230, %cst_191 {dimension_numbers = #tpu.dot_dimension_numbers<[1], [0], [0], [1], [0, 0, 1, 1], [], []>} : vector<4x4xf32>, vector<4x256xf32>, vector<4x256xf32> -> vector<4x256xf32>
    %234 = arith.addf %223, %233 : vector<4x256xf32>
    %c2_192 = arith.constant 2 : index
    %c1_193 = arith.constant 1 : index
    %c1_194 = arith.constant 1 : index
    %c0_195 = arith.constant 0 : index
    %c0_196 = arith.constant 0 : index
    %235 = vector.load %arg2[%c2_192, %c1_193, %c1_194, %c0_195, %c0_196] : memref<3x3x3x4x4xf32, #tpu.memory_space<vmem>>, vector<1x1x1x4x4xf32>
    %236 = vector.shape_cast %235 : vector<1x1x1x4x4xf32> to vector<4x4xf32>
    %cst_197 = arith.constant dense<0.000000e+00> : vector<4x256xf32>
    %237 = tpu.matmul %236, %191, %cst_197 {dimension_numbers = #tpu.dot_dimension_numbers<[1], [0], [0], [1], [0, 0, 1, 1], [], []>} : vector<4x4xf32>, vector<4x256xf32>, vector<4x256xf32> -> vector<4x256xf32>
    %238 = arith.addf %234, %237 : vector<4x256xf32>
    %239 = vector.extract_strided_slice %191 {offsets = [0, 1], sizes = [4, 255], strides = [1, 1]} : vector<4x256xf32> to vector<4x255xf32>
    %240 = vector.extract_strided_slice %191 {offsets = [0, 0], sizes = [4, 1], strides = [1, 1]} : vector<4x256xf32> to vector<4x1xf32>
    %241 = tpu.concatenate %239, %240 in 1 : vector<4x255xf32>, vector<4x1xf32> -> vector<4x256xf32>
    %c5_198 = arith.constant 5 : index
    %c0_199 = arith.constant 0 : index
    %c0_200 = arith.constant 0 : index
    %242 = vector.load %arg4[%c5_198, %c0_199, %c0_200] : memref<9x1x256xf32, #tpu.memory_space<vmem>>, vector<1x1x256xf32>
    %243 = vector.shape_cast %242 : vector<1x1x256xf32> to vector<1x256xf32>
    %244 = vector.broadcast %243 : vector<1x256xf32> to vector<4x256xf32>
    %245 = arith.mulf %241, %244 : vector<4x256xf32>
    %c2_201 = arith.constant 2 : index
    %c1_202 = arith.constant 1 : index
    %c2_203 = arith.constant 2 : index
    %c0_204 = arith.constant 0 : index
    %c0_205 = arith.constant 0 : index
    %246 = vector.load %arg2[%c2_201, %c1_202, %c2_203, %c0_204, %c0_205] : memref<3x3x3x4x4xf32, #tpu.memory_space<vmem>>, vector<1x1x1x4x4xf32>
    %247 = vector.shape_cast %246 : vector<1x1x1x4x4xf32> to vector<4x4xf32>
    %cst_206 = arith.constant dense<0.000000e+00> : vector<4x256xf32>
    %248 = tpu.matmul %247, %245, %cst_206 {dimension_numbers = #tpu.dot_dimension_numbers<[1], [0], [0], [1], [0, 0, 1, 1], [], []>} : vector<4x4xf32>, vector<4x256xf32>, vector<4x256xf32> -> vector<4x256xf32>
    %249 = arith.addf %238, %248 : vector<4x256xf32>
    %250 = vector.extract_strided_slice %191 {offsets = [0, 15], sizes = [4, 241], strides = [1, 1]} : vector<4x256xf32> to vector<4x241xf32>
    %251 = vector.extract_strided_slice %191 {offsets = [0, 0], sizes = [4, 15], strides = [1, 1]} : vector<4x256xf32> to vector<4x15xf32>
    %252 = tpu.concatenate %250, %251 in 1 : vector<4x241xf32>, vector<4x15xf32> -> vector<4x256xf32>
    %c6_207 = arith.constant 6 : index
    %c0_208 = arith.constant 0 : index
    %c0_209 = arith.constant 0 : index
    %253 = vector.load %arg4[%c6_207, %c0_208, %c0_209] : memref<9x1x256xf32, #tpu.memory_space<vmem>>, vector<1x1x256xf32>
    %254 = vector.shape_cast %253 : vector<1x1x256xf32> to vector<1x256xf32>
    %255 = vector.broadcast %254 : vector<1x256xf32> to vector<4x256xf32>
    %256 = arith.mulf %252, %255 : vector<4x256xf32>
    %c2_210 = arith.constant 2 : index
    %c2_211 = arith.constant 2 : index
    %c0_212 = arith.constant 0 : index
    %c0_213 = arith.constant 0 : index
    %c0_214 = arith.constant 0 : index
    %257 = vector.load %arg2[%c2_210, %c2_211, %c0_212, %c0_213, %c0_214] : memref<3x3x3x4x4xf32, #tpu.memory_space<vmem>>, vector<1x1x1x4x4xf32>
    %258 = vector.shape_cast %257 : vector<1x1x1x4x4xf32> to vector<4x4xf32>
    %cst_215 = arith.constant dense<0.000000e+00> : vector<4x256xf32>
    %259 = tpu.matmul %258, %256, %cst_215 {dimension_numbers = #tpu.dot_dimension_numbers<[1], [0], [0], [1], [0, 0, 1, 1], [], []>} : vector<4x4xf32>, vector<4x256xf32>, vector<4x256xf32> -> vector<4x256xf32>
    %260 = arith.addf %249, %259 : vector<4x256xf32>
    %261 = vector.extract_strided_slice %191 {offsets = [0, 16], sizes = [4, 240], strides = [1, 1]} : vector<4x256xf32> to vector<4x240xf32>
    %262 = vector.extract_strided_slice %191 {offsets = [0, 0], sizes = [4, 16], strides = [1, 1]} : vector<4x256xf32> to vector<4x16xf32>
    %263 = tpu.concatenate %261, %262 in 1 : vector<4x240xf32>, vector<4x16xf32> -> vector<4x256xf32>
    %c7_216 = arith.constant 7 : index
    %c0_217 = arith.constant 0 : index
    %c0_218 = arith.constant 0 : index
    %264 = vector.load %arg4[%c7_216, %c0_217, %c0_218] : memref<9x1x256xf32, #tpu.memory_space<vmem>>, vector<1x1x256xf32>
    %265 = vector.shape_cast %264 : vector<1x1x256xf32> to vector<1x256xf32>
    %266 = vector.broadcast %265 : vector<1x256xf32> to vector<4x256xf32>
    %267 = arith.mulf %263, %266 : vector<4x256xf32>
    %c2_219 = arith.constant 2 : index
    %c2_220 = arith.constant 2 : index
    %c1_221 = arith.constant 1 : index
    %c0_222 = arith.constant 0 : index
    %c0_223 = arith.constant 0 : index
    %268 = vector.load %arg2[%c2_219, %c2_220, %c1_221, %c0_222, %c0_223] : memref<3x3x3x4x4xf32, #tpu.memory_space<vmem>>, vector<1x1x1x4x4xf32>
    %269 = vector.shape_cast %268 : vector<1x1x1x4x4xf32> to vector<4x4xf32>
    %cst_224 = arith.constant dense<0.000000e+00> : vector<4x256xf32>
    %270 = tpu.matmul %269, %267, %cst_224 {dimension_numbers = #tpu.dot_dimension_numbers<[1], [0], [0], [1], [0, 0, 1, 1], [], []>} : vector<4x4xf32>, vector<4x256xf32>, vector<4x256xf32> -> vector<4x256xf32>
    %271 = arith.addf %260, %270 : vector<4x256xf32>
    %272 = vector.extract_strided_slice %191 {offsets = [0, 17], sizes = [4, 239], strides = [1, 1]} : vector<4x256xf32> to vector<4x239xf32>
    %273 = vector.extract_strided_slice %191 {offsets = [0, 0], sizes = [4, 17], strides = [1, 1]} : vector<4x256xf32> to vector<4x17xf32>
    %274 = tpu.concatenate %272, %273 in 1 : vector<4x239xf32>, vector<4x17xf32> -> vector<4x256xf32>
    %c8_225 = arith.constant 8 : index
    %c0_226 = arith.constant 0 : index
    %c0_227 = arith.constant 0 : index
    %275 = vector.load %arg4[%c8_225, %c0_226, %c0_227] : memref<9x1x256xf32, #tpu.memory_space<vmem>>, vector<1x1x256xf32>
    %276 = vector.shape_cast %275 : vector<1x1x256xf32> to vector<1x256xf32>
    %277 = vector.broadcast %276 : vector<1x256xf32> to vector<4x256xf32>
    %278 = arith.mulf %274, %277 : vector<4x256xf32>
    %c2_228 = arith.constant 2 : index
    %c2_229 = arith.constant 2 : index
    %c2_230 = arith.constant 2 : index
    %c0_231 = arith.constant 0 : index
    %c0_232 = arith.constant 0 : index
    %279 = vector.load %arg2[%c2_228, %c2_229, %c2_230, %c0_231, %c0_232] : memref<3x3x3x4x4xf32, #tpu.memory_space<vmem>>, vector<1x1x1x4x4xf32>
    %280 = vector.shape_cast %279 : vector<1x1x1x4x4xf32> to vector<4x4xf32>
    %cst_233 = arith.constant dense<0.000000e+00> : vector<4x256xf32>
    %281 = tpu.matmul %280, %278, %cst_233 {dimension_numbers = #tpu.dot_dimension_numbers<[1], [0], [0], [1], [0, 0, 1, 1], [], []>} : vector<4x4xf32>, vector<4x256xf32>, vector<4x256xf32> -> vector<4x256xf32>
    %282 = arith.addf %271, %281 : vector<4x256xf32>
    %c2_234 = arith.constant 2 : index
    %c0_235 = arith.constant 0 : index
    %c0_236 = arith.constant 0 : index
    %283 = vector.load %arg3[%c2_234, %c0_235, %c0_236] : memref<3x4x1xf32, #tpu.memory_space<vmem>>, vector<1x4x1xf32>
    %284 = vector.shape_cast %283 : vector<1x4x1xf32> to vector<4x1xf32>
    %285 = vector.broadcast %284 : vector<4x1xf32> to vector<4x256xf32>
    %286 = arith.addf %282, %285 : vector<4x256xf32>
    %c0_237 = arith.constant 0 : index
    %c0_238 = arith.constant 0 : index
    %c0_239 = arith.constant 0 : index
    %287 = vector.load %arg5[%c0_237, %c0_238, %c0_239] : memref<1x4x256xf32, #tpu.memory_space<vmem>>, vector<1x4x256xf32>
    %288 = vector.shape_cast %287 : vector<1x4x256xf32> to vector<4x256xf32>
    %289 = vector.shape_cast %286 : vector<4x256xf32> to vector<1x4x256xf32>
    tpu.vector_store %arg5[%c0_237, %c0_238, %c0_239], %289 {strides = array<i32>} : memref<1x4x256xf32, #tpu.memory_space<vmem>>, vector<1x4x256xf32>,
    return
  }
  func.func @transform_0(%arg0: i32) -> (i32, i32, i32) {
    %c0_i32 = arith.constant 0 : i32
    %c0_i32_0 = arith.constant 0 : i32
    %c0_i32_1 = arith.constant 0 : i32
    return %arg0, %c0_i32, %c0_i32_0 : i32, i32, i32
  }
  func.func @transform_1(%arg0: i32) -> (i32, i32, i32, i32, i32) {
    %c0_i32 = arith.constant 0 : i32
    %c0_i32_0 = arith.constant 0 : i32
    %c0_i32_1 = arith.constant 0 : i32
    %c0_i32_2 = arith.constant 0 : i32
    %c0_i32_3 = arith.constant 0 : i32
    %c0_i32_4 = arith.constant 0 : i32
    return %c0_i32, %c0_i32_0, %c0_i32_1, %c0_i32_2, %c0_i32_3 : i32, i32, i32, i32, i32
  }
  func.func @transform_2(%arg0: i32) -> (i32, i32, i32) {
    %c0_i32 = arith.constant 0 : i32
    %c0_i32_0 = arith.constant 0 : i32
    %c0_i32_1 = arith.constant 0 : i32
    %c0_i32_2 = arith.constant 0 : i32
    return %c0_i32, %c0_i32_0, %c0_i32_1 : i32, i32, i32
  }
  func.func @transform_3(%arg0: i32) -> (i32, i32, i32) {
    %c0_i32 = arith.constant 0 : i32
    %c0_i32_0 = arith.constant 0 : i32
    %c0_i32_1 = arith.constant 0 : i32
    %c0_i32_2 = arith.constant 0 : i32
    return %c0_i32, %c0_i32_0, %c0_i32_1 : i32, i32, i32
  }
  func.func @transform_4(%arg0: i32) -> (i32, i32, i32) {
    %c0_i32 = arith.constant 0 : i32
    %c0_i32_0 = arith.constant 0 : i32
    %c0_i32_1 = arith.constant 0 : i32
    return %arg0, %c0_i32, %c0_i32_0 : i32, i32, i32
  }
}

</mosaic_0001>

<bundles_post_ra>
// kernel: tpu_custom_call.1
= control target key start
LH: loop header
LB: loop body
LE: loop exit
PB: predicated region body
PF: predicated region fallthrough
CT: control target
= control target key end

     0   :  { %9 = vsyncpa [#allocation3], 0  ;;  %s3083_s0 = inlined_call_operand.hbm [shape: f32[2,4,256], index: 0, kind: input, shape index: {}]   ;;  %s3084_s1 = inlined_call_operand.hbm [shape: f32[3,3,3,4,4], index: 1, kind: input, shape index: {}]   ;;  %s3085_s2 = inlined_call_operand.vmem [shape: f32[3,4,1], index: 2, kind: input, shape index: {}]   ;;  %s3086_s3 = inlined_call_operand.hbm [shape: f32[9,1,256], index: 3, kind: input, shape index: {}]   ;;  %s3087_s4 = inlined_call_operand.hbm [shape: f32[2,4,256], index: 4, kind: output, shape index: {}]  }
   0x1   :  { %11 = vsyncpa [#allocation3 + $0x1], 0 }
   0x2   :  { %12 = vsyncpa [#allocation6], 0 }
   0x3   :  { %13 = vsyncpa [#allocation4], 0 }
   0x4   :  { %15 = vsyncpa [#allocation4 + $0x1], 0  ;;  %s2607_s15 = smov 0   ;;  %s2609_s16 = smov 0  }
   0x5   :  { %s2611_s17 = smov 0   ;;  %s2613_s18 = smov 0  }
   0x6 LB: > { %s152_s21 = sshll.u32 %s3084_s1, 4  ;;  %s2631_s22 = sadd.s32 4294967295, %s2565_s18   ;;  %s2565_s18 = sphi %s2613_s18, %s3098_s18   ;;  %s2561_s17 = sphi %s2611_s17, %s3097_s17   ;;  %s2557_s16 = sphi %s2609_s16, %s3096_s16   ;;  %s2553_s15 = sphi %s2607_s15, %s3095_s15   ;;  %s153_s21 = int_to_ptr.hbm [resolvable:$true] %s152_s21 }
   0x7   : > { %p2194_p0 = scmp.ge.s32.totalorder %s2565_s18, 1  ;;  %p42_p1 = scmp.eq.s32.totalorder %s2631_s22, 0 }
   0x8   : > { %p141_p2 = scmp.lt.s32.totalorder %s2565_s18, 3  ;;  %s2567_s24 = smov [#allocation5]  }
   0x9   : > { %s154_s25 = sshll.u32 %s2567_s24, 4  ;;  %s169_s28 = sshll.u32 %s3086_s3, 4  ;;  %s155_s25 = int_to_ptr.vmem [resolvable:$true] %s154_s25  ;;  %s170_s28 = int_to_ptr.hbm [resolvable:$true] %s169_s28 }
   0xa   : > { %p2636_p3 = pnand %p2194_p0, %p141_p2  ;;  %s2568_s29 = smov [#allocation7]  }
   0xb   : > { %s171_s30 = sshll.u32 %s2568_s29, 4  ;;  %s2569_s5 = smov 64   ;;  %s172_s30 = int_to_ptr.vmem [resolvable:$true] %s171_s30 }
   0xc   : > { %p2335_p4 = pneg %p2636_p3  ;;  %s2570_s6 = smov 4  }
   0xd   : > { %s2571_s7 = smov 32   ;;  %s2572_s8 = smov 2  }
   0xe   : > { %p2336_p6 = pnand %p2335_p4, %p42_p1  ;;  %s2193_s9 = sadd.s32 4294967294, %s2565_s18  }
   0xf   : > { %s2650_s10 = sadd.s32 1, %s2565_s18   ;;  %s28_s12 = sadd.s32 1, %s2561_s17 }
  0x10   : > { %2338 = dma.hbm_to_vmem [thread:$0]  (!%p2336_p6), %s153_s21, 1728, %s155_s25, [#allocation6], %s2569_s5, %s2569_s5, %s2570_s6  }
  0x11   : > { %2341 = dma.hbm_to_vmem [thread:$0]  (!%p2336_p6), %s170_s28, 288, %s172_s30, [#allocation6], %s2571_s7, %s2571_s7, %s2572_s8  }
  0x12   : > { %s25_s11 = ssub.s32 %s2565_s18, %s2650_s10  ;;  %p35_p8 = scmp.ne.s32.totalorder %s2561_s17, %s2557_s16 }
  0x13   : > { %p26_p7 = scmp.eq.s32.totalorder %s25_s11, 0  ;;  %p36_p9 = scmp.eq.s32.totalorder %s2565_s18, 0 }
  0x14   : > { %p41_p10 = scmp.ne.s32.totalorder %s2557_s16, %s2553_s15  ;;  %p128_p13 = scmp.eq.s32.totalorder %s2631_s22, 1 }
  0x15   : > { %s2661_s13 = scalar_select %p26_p7, %s2561_s17, %s28_s12  }
  0x16   : > { %p2663_p11 = por %p36_p9, %p35_p8  ;;  %p2669_p12 = por %p42_p1, %p41_p10 }
  0x17   : > { %p134_p0 = scmp.eq.s32.totalorder %s2193_s9, 1  ;;  %p2352_p2 = scmp.lt.s32.totalorder %s2565_s18, 2 }
  0x18   : > { %s185_s20 = sand.u32 1, %s2561_s17   ;;  %p2676_p4 = por %p128_p13, %p35_p8 }
  0x19   : > { %p2680_p6 = por %p134_p0, %p41_p10  ;;  %s2198_s25 = sshll.u32 %s185_s20, 3 }
  0x1a   : > { %s2321_s26 = sshll.u32 %s2565_s18, 3  ;;  %s189_s30 = scalar_lea.vmem [#allocation2], %s2198_s25 }
  0x1b   : > { %s194_s29 = scalar_lea.hbm %s3083_s0, %s2321_s26  ;;  %s198_s5 = sshll.u32 %s189_s30, 4  ;;  %s199_s5 = int_to_ptr.vmem [resolvable:$true] %s198_s5 }
  0x1c   : > { %s196_s6 = sshll.u32 %s194_s29, 4  ;;  %p2690_p7 = pnand %p2352_p2, %p2663_p11  ;;  %s197_s6 = int_to_ptr.hbm [resolvable:$true] %s196_s6 }
  0x1d   : > { %s186_s8 = scalar_lea.sflag [#allocation3], %s185_s20  ;;  %s2465_s9 = sshra.s32 %s197_s6, 4  ;;  %s2466_s9 = int_to_ptr.hbm [resolvable:$true] %s2465_s9 }
  0x1e   : > { %s2467_s11 = scalar_lea.hbm %s2466_s9, 8  ;;  %p2469_p9 = pneg %p2690_p7 }
  0x1f   : > { %p2468_p8 = scmp.ne.s32.totalorder %s2466_s9, %s2467_s11  ;;  %s2472_s26 = scalar_lea.hbm %s3083_s0, 16 }
  0x20   : > { %p2473_p11 = scmp.lt.s32.totalorder %s2466_s9, %s3083_s0  ;;  %p2474_p0 = scmp.lt.s32.totalorder %s2472_s26, %s2467_s11 }
  0x21   : > { %p2470_p10 = pnand %p2469_p9, %p2468_p8 }
  0x22   : > { %p2475_p2 = por %p2474_p0, %p2473_p11 }
  0x23   : > { %p2471_p13 = pneg %p2470_p10 }
  0x25   : > { %p2476_p5 = pnand %p2475_p2, %p2471_p13 }
  0x27   : > { %2479 = shalt.err (!%p2476_p5)
}
  0x28   : > { %2345 = dma.hbm_to_vmem [thread:$0]  (!%p2690_p7), %s197_s6, 128, %s199_s5, %s186_s8  }
  0x29   : > { %207 = sbr.rel (%p2636_p3) target bundleno = 1015 (0x3f7), region = 36  ;;  %s2707_s20 = sand.u32 (!%p2636_p3), 1, %s2557_s16  }
  0x2a   : > { %s2202_s28 = sshll.u32 (!%p2636_p3), %s2707_s20, 3  ;;  %s210_s29 = scalar_lea.sflag (!%p2636_p3), [#allocation3], %s2707_s20 }
  0x2b   : > { %s213_s30 = scalar_lea.vmem (!%p2636_p3), [#allocation2], %s2202_s28 }
  0x2e   : > { %2540 = dma.done.wait (%p2669_p12), %s210_s29, 128  }
  0x2f   : > { %2542 = vsyncadd (%p2669_p12), %s210_s29, 4294967168 }
  0x30   : > { %2544 = dma.done.wait (%p42_p1), [#allocation6], 2016  }
  0x31   : > { %2546 = vsyncadd (%p42_p1), [#allocation6], 4294965280  ;;  %v2721_v0 = vld [vmem:[%s213_s30] sm:$0xff]  ;;  %s2573_s23 = smov 17   ;;  %s2574_s19 = smov 16   ;;  %vm263_vm0 = vcmask 138240  }
  0x32   : > { %251 = vst [vmem:[#allocation1] ss:$2 sm:$0xff] %v2721_v0  ;;  %s2575_s5 = smov 15   ;;  %s2576_s6 = smov 1   ;;  %v268_v26 = vld [vmem:[#allocation7] sm:$0x3] }
  0x33   : > { %s2577_s7 = smov 127   ;;  %s2578_s8 = smov 113   ;;  %v295_v27 = vld [vmem:[#allocation7 + $0x2] sm:$0x3]  ;;  %v2767_v30 = vperm.slane %v268_v26, 1  ;;  %vm289_vm1 = vcmask 130048  }
  0x34   : > { %s2579_s9 = smov 112   ;;  %s2580_s11 = smov 111   ;;  %v2769_v31 = vperm.slane %v295_v27, 1  ;;  %vm309_vm2 = vcmask 1043456   ;;  %vm305_vm3 = vcmask 31744   ;;  %v2779_v42 = vperm.slane %v295_v27, 0 }
  0x35   : > { %v276_v38 = vld [vmem:[#allocation5] sm:$0xf]  ;;  %v304_v40 = vld [vmem:[#allocation5 + $0x4] sm:$0xf]  ;;  %v2787_v47 = vperm.slane %v268_v26, 0  ;;  %vm417_vm4 = vcmask 121856  }
  0x36   : > { %v423_v49 = vld [vmem:[#allocation7 + $0x4] sm:$0x3]  ;;  %v432_v59 = vld [vmem:[#allocation5 + $0x8] sm:$0xf]  ;;  %v502_v61 = vld [vmem:[#allocation7 + $0x6] sm:$0x3] }
  0x37   : > { %v2792_v50 = vperm.slane %v423_v49, 1  ;;  %v2794_v51 = vperm.slane %v423_v49, 0  ;;  %v564_v60 = vld [vmem:[#allocation5 + $0x10] sm:$0xf]  ;;  %vm496_vm5 = vcmask 7168   ;;  %v2810_v62 = vperm.slane %v502_v61, 1 }
  0x38   : > { %v2812_v63 = vperm.slane %v502_v61, 0  ;;  %vm624_vm6 = vcmask 1039360   ;;  %vm703_vm7 = vcmask 924672   ;;  %vm782_vm8 = vcmask 916480   ;;  %s2322_s30 = sshll.u32 %s2631_s22, 3 }
  0x39   : > { %v252_v1 = vld.sshfl [vmem:[#allocation1 + $0x8] sm:$0xff pattern:$0x75316420]  ;;  %vm861_vm9 = vcmask 908288  }
  0x3a   : > { %253 = vrot.lane.b32.xlu0 %v252_v1, %s2573_s23  ;;  %256 = vst [vmem:[#allocation1] ss:$2 sm:$0xff] %v2721_v0 }
  0x41   : > { %v258_v2 = vld.sshfl [vmem:[#allocation1 + $0x8] sm:$0xff pattern:$0x75316420]  ;;  %v257_v3 = vld.sshfl [vmem:[#allocation1] sm:$0xff pattern:$0x75316420] }
  0x42   : > { %261 = vrot.lane.b32.xlu1 %v258_v2, %s2573_s23  ;;  %259 = vrot.lane.b32.xlu0 %v257_v3, %s2573_s23  ;;  %277 = vst [vmem:[#allocation1] ss:$2 sm:$0xff] %v2721_v0 }
  0x49   : > { %v278_v4 = vld.sshfl [vmem:[#allocation1 + $0x8] sm:$0xff pattern:$0x75316420] }
  0x4a   : > { %279 = vrot.lane.b32.xlu1 %v278_v4, %s2574_s19  ;;  %282 = vst [vmem:[#allocation1] ss:$2 sm:$0xff] %v2721_v0 }
  0x51   : > { %v283_v5 = vld.sshfl [vmem:[#allocation1] sm:$0xff pattern:$0x75316420]  ;;  %v284_v6 = vld.sshfl [vmem:[#allocation1 + $0x8] sm:$0xff pattern:$0x75316420] }
  0x52   : > { %405 = vst [vmem:[#allocation1] ss:$2 sm:$0xff] %v2721_v0  ;;  %285 = vrot.lane.b32.xlu2 %v283_v5, %s2574_s19 }
  0x59   : > { %v406_v7 = vld.sshfl [vmem:[#allocation1 + $0x8] sm:$0xff pattern:$0x75316420] }
  0x5a   : > { %410 = vst [vmem:[#allocation1] ss:$2 sm:$0xff] %v2721_v0  ;;  %407 = vrot.lane.b32.xlu0 %v406_v7, %s2575_s5  ;;  %287 = vrot.lane.b32.xlu2 %v284_v6, %s2574_s19  ;;  %v511_v7 = vld [vmem:[#allocation5 + $0xc] sm:$0xf] }
  0x61   : > { %v411_v8 = vld.sshfl [vmem:[#allocation1] sm:$0xff pattern:$0x75316420]  ;;  %v412_v9 = vld.sshfl [vmem:[#allocation1 + $0x8] sm:$0xff pattern:$0x75316420] }
  0x62   : > { %413 = vrot.lane.b32.xlu1 %v411_v8, %s2575_s5  ;;  %484 = vst [vmem:[#allocation1] ss:$2 sm:$0xff] %v2721_v0  ;;  %415 = vrot.lane.b32.xlu2 %v412_v9, %s2575_s5  ;;  %v635_v8 = vld [vmem:[#allocation7 + $0xa] sm:$0x3] }
  0x63   : > { %v2822_v9 = vperm.slane %v635_v8, 1 }
  0x69   : > { %v485_v10 = vld.sshfl [vmem:[#allocation1 + $0x8] sm:$0xff pattern:$0x75316420] }
  0x6a   : > { %489 = vst [vmem:[#allocation1] ss:$2 sm:$0xff] %v2721_v0  ;;  %486 = vrot.lane.b32.xlu0 %v485_v10, %s2576_s6  ;;  %v2824_v10 = vperm.slane %v635_v8, 0 }
  0x71   : > { %v490_v11 = vld.sshfl [vmem:[#allocation1] sm:$0xff pattern:$0x75316420]  ;;  %v491_v12 = vld.sshfl [vmem:[#allocation1 + $0x8] sm:$0xff pattern:$0x75316420] }
  0x72   : > { %492 = vrot.lane.b32.xlu1 %v490_v11, %s2576_s6  ;;  %565 = vst [vmem:[#allocation1] ss:$2 sm:$0xff] %v2721_v0  ;;  %494 = vrot.lane.b32.xlu2 %v491_v12, %s2576_s6 }
  0x79   : > { %v2744_v13 = vld.sshfl [vmem:[#allocation1] sm:$0xff pattern:$0x75316420]  ;;  %v2746_v14 = vld.sshfl [vmem:[#allocation1 + $0x8] sm:$0xff pattern:$0x75316420] }
  0x7a   : > { %617 = vst [vmem:[#allocation1] ss:$2 sm:$0xff] %v2721_v0 }
  0x81   : > { %v619_v15 = vld.sshfl [vmem:[#allocation1 + $0x8] sm:$0xff pattern:$0x75316420]  ;;  %v618_v16 = vld.sshfl [vmem:[#allocation1] sm:$0xff pattern:$0x75316420] }
  0x82   : > { %622 = vrot.lane.b32.xlu1 %v619_v15, %s2577_s7  ;;  %620 = vrot.lane.b32.xlu0 %v618_v16, %s2577_s7  ;;  %628 = vst [vmem:[#allocation1] ss:$2 sm:$0xff] %v2721_v0 }
  0x89   : > { %v629_v17 = vld.sshfl [vmem:[#allocation1] sm:$0xff pattern:$0x75316420] }
  0x8a   : > { %696 = vst [vmem:[#allocation1] ss:$2 sm:$0xff] %v2721_v0  ;;  %630 = vrot.lane.b32.xlu2 %v629_v17, %s2577_s7 }
  0x91   : > { %v698_v18 = vld.sshfl [vmem:[#allocation1 + $0x8] sm:$0xff pattern:$0x75316420]  ;;  %v697_v19 = vld.sshfl [vmem:[#allocation1] sm:$0xff pattern:$0x75316420] }
  0x92   : > { %701 = vrot.lane.b32.xlu1 %v698_v18, %s2578_s8  ;;  %699 = vrot.lane.b32.xlu0 %v697_v19, %s2578_s8  ;;  %707 = vst [vmem:[#allocation1] ss:$2 sm:$0xff] %v2721_v0  ;;  %v644_v18 = vld [vmem:[#allocation5 + $0x14] sm:$0xf]  ;;  %v714_v19 = vld [vmem:[#allocation7 + $0xc] sm:$0x3] }
  0x99   : > { %v708_v20 = vld.sshfl [vmem:[#allocation1] sm:$0xff pattern:$0x75316420] }
  0x9a   : > { %775 = vst [vmem:[#allocation1] ss:$2 sm:$0xff] %v2721_v0  ;;  %709 = vrot.lane.b32.xlu2 %v708_v20, %s2578_s8  ;;  %v2834_v20 = vperm.slane %v714_v19, 1 }
  0xa1   : > { %v777_v21 = vld.sshfl [vmem:[#allocation1 + $0x8] sm:$0xff pattern:$0x75316420]  ;;  %v776_v22 = vld.sshfl [vmem:[#allocation1] sm:$0xff pattern:$0x75316420] }
  0xa2   : > { %780 = vrot.lane.b32.xlu1 %v777_v21, %s2579_s9  ;;  %778 = vrot.lane.b32.xlu0 %v776_v22, %s2579_s9  ;;  %786 = vst [vmem:[#allocation1] ss:$2 sm:$0xff] %v2721_v0  ;;  %v2836_v21 = vperm.slane %v714_v19, 0 }
  0xa9   : > { %v787_v23 = vld.sshfl [vmem:[#allocation1] sm:$0xff pattern:$0x75316420] }
  0xaa   : > { %854 = vst [vmem:[#allocation1] ss:$2 sm:$0xff] %v2721_v0  ;;  %788 = vrot.lane.b32.xlu2 %v787_v23, %s2579_s9 }
  0xac   : > { %v254_v24 = vpop.permute.xlu0 %253  ;;  %v286_v25 = vpop.permute.xlu2 %285 }
  0xb1   : > { %v856_v28 = vld.sshfl [vmem:[#allocation1 + $0x8] sm:$0xff pattern:$0x75316420]  ;;  %v855_v29 = vld.sshfl [vmem:[#allocation1] sm:$0xff pattern:$0x75316420] }
  0xb2   : > { %859 = vrot.lane.b32.xlu1 %v856_v28, %s2580_s11  ;;  %857 = vrot.lane.b32.xlu0 %v855_v29, %s2580_s11  ;;  %865 = vst [vmem:[#allocation1] ss:$2 sm:$0xff] %v2721_v0  ;;  %v723_v29 = vld [vmem:[#allocation5 + $0x18] sm:$0xf] }
  0xb4   : > { %v262_v32 = vpop.permute.xlu1 %261  ;;  %v260_v33 = vpop.permute.xlu0 %259 }
  0xb5   : > { %v264_v34 = vsel %vm263_vm0, %v260_v33, %v262_v32  ;;  %v288_v35 = vpop.permute.xlu2 %287  ;;  %v267_v46 = vsel %vm263_vm0, %v254_v24, %v260_v33  ;;  %v933_v32 = vld [vmem:[%s3085_s2] sm:$0xf]  ;;  %v2581_v33 = vmov 0  }
  0xb6   : > { %v290_v36 = vsel %vm289_vm1, %v286_v25, %v288_v35  ;;  %v275_v37 = vmul.f32 %v2767_v30, %v264_v34  ;;  %v274_v48 = vmul.f32 %v2787_v47, %v267_v46  ;;  %2403 = vset.pattern.permute.xlu0 %v2581_v33  ;;  %2404 = vset.pattern.permute.xlu2 %v2581_v33  ;;  %v793_v34 = vld [vmem:[#allocation7 + $0xe] sm:$0x3]  ;;  %v872_v46 = vld [vmem:[#allocation7 + $0x10] sm:$0x3] }
  0xb7   : > { %v302_v39 = vmul.f32 %v2769_v31, %v290_v36  ;;  %v2849_v35 = vperm.slane %v793_v34, 1  ;;  %v2863_v49 = vperm.slane %v872_v46, 1 }
  0xb8   : > { %2212 = vmatpush.msk.msra.mxu3 %vm309_vm2, %v275_v37  ;;  %2210 = vmatpush.msk.msra.mxu2 %vm309_vm2, %v274_v48  ;;  %v2851_v37 = vperm.slane %v793_v34, 0  ;;  %v2861_v48 = vperm.slane %v872_v46, 0 }
  0xb9   : > { %v866_v41 = vld.sshfl [vmem:[#allocation1] sm:$0xff pattern:$0x75316420]  ;;  %2208 = vmatpush.msk.msra.mxu1 %vm309_vm2, %v302_v39  ;;  %2213 = vmatmul.msk.f32.vlgmr.msra.gmra.mxu3 %vm305_vm3, %v276_v38 }
  0xba   : > { %867 = vrot.lane.b32.xlu2 %v866_v41, %s2580_s11  ;;  %2209 = vmatmul.msk.f32.vlgmr.msra.gmra.mxu1 %vm305_vm3, %v304_v40 }
  0xbb   : > { %2211 = vmatmul.msk.f32.vlgmr.msra.gmra.mxu2 %vm305_vm3, %v276_v38  ;;  %936 = vperm.xlu0 %2403, %v933_v32  }
  0xbc   : > { %v280_v43 = vpop.permute.xlu1 %279 }
  0xbd   : > { %v293_v44 = vsel %vm289_vm1, %v280_v43, %v286_v25  ;;  %v416_v52 = vpop.permute.xlu2 %415 }
  0xbe   : > { %v301_v45 = vmul.f32 %v2779_v42, %v293_v44  ;;  %v802_v44 = vld [vmem:[#allocation5 + $0x1c] sm:$0xf] }
  0xc0   : > { %2206 = vmatpush.msk.msra.mxu0 %vm309_vm2, %v301_v45 }
  0xc1   : > { %2207 = vmatmul.msk.f32.vlgmr.msra.gmra.mxu0 %vm305_vm3, %v304_v40 }
  0xcc   : > { %v408_v54 = vpop.permute.xlu0 %407  ;;  %v495_v0 = vpop.permute.xlu2 %494 }
  0xd4   : > { %v414_v53 = vpop.permute.xlu1 %413 }
  0xd5   : > { %v418_v55 = vsel %vm417_vm4, %v414_v53, %v416_v52  ;;  %v421_v56 = vsel %vm417_vm4, %v408_v54, %v414_v53 }
  0xd6   : > { %v430_v57 = vmul.f32 %v2792_v50, %v418_v55  ;;  %v429_v58 = vmul.f32 %v2794_v51, %v421_v56 }
  0xd8   : > { %2214 = vmatpush.msk.msrb.mxu0 %vm309_vm2, %v429_v58  ;;  %2216 = vmatpush.msk.msrb.mxu1 %vm309_vm2, %v430_v57 }
  0xd9   : > { %2217 = vmatmul.msk.f32.vlgmr.msrb.gmra.mxu1 %vm305_vm3, %v432_v59  ;;  %2215 = vmatmul.msk.f32.vlgmr.msrb.gmra.mxu0 %vm305_vm3, %v432_v59  ;;  %v881_v59 = vld [vmem:[#allocation5 + $0x20] sm:$0xf] }
  0xda   : > { %2224 = vmatpush.msk.msra.mxu1 %vm309_vm2, %v2746_v14  ;;  %2222 = vmatpush.msk.msra.mxu0 %vm309_vm2, %v2744_v13 }
  0xdc   : > { %v487_v2 = vpop.permute.xlu0 %486 }
  0xe1   : > { %2225 = vmatmul.msk.f32.vlgmr.msra.gmra.mxu1 %vm305_vm3, %v564_v60  ;;  %2223 = vmatmul.msk.f32.vlgmr.msra.gmra.mxu0 %vm305_vm3, %v564_v60 }
  0xe4   : > { %v493_v1 = vpop.permute.xlu1 %492  ;;  %v631_v11 = vpop.permute.xlu2 %630 }
  0xe5   : > { %v497_v3 = vsel %vm496_vm5, %v493_v1, %v495_v0  ;;  %v500_v4 = vsel %vm496_vm5, %v487_v2, %v493_v1 }
  0xe6   : > { %v509_v5 = vmul.f32 %v2810_v62, %v497_v3  ;;  %v508_v6 = vmul.f32 %v2812_v63, %v500_v4 }
  0xe8   : > { %2220 = vmatpush.msk.msrb.mxu3 %vm309_vm2, %v509_v5  ;;  %2218 = vmatpush.msk.msrb.mxu2 %vm309_vm2, %v508_v6 }
  0xe9   : > { %2221 = vmatmul.msk.f32.vlgmr.msrb.gmra.mxu3 %vm305_vm3, %v511_v7  ;;  %2219 = vmatmul.msk.f32.vlgmr.msrb.gmra.mxu2 %vm305_vm3, %v511_v7 }
  0xf4   : > { %v623_v12 = vpop.permute.xlu1 %622  ;;  %v621_v13 = vpop.permute.xlu0 %620 }
  0xf5   : > { %v633_v14 = vsel %vm624_vm6, %v623_v12, %v631_v11  ;;  %v625_v15 = vsel %vm624_vm6, %v621_v13, %v623_v12  ;;  %v710_v22 = vpop.permute.xlu2 %709 }
  0xf6   : > { %v642_v16 = vmul.f32 %v2822_v9, %v633_v14  ;;  %v641_v17 = vmul.f32 %v2824_v10, %v625_v15 }
  0xf8   : > { %2228 = vmatpush.msk.msra.mxu3 %vm309_vm2, %v642_v16  ;;  %2226 = vmatpush.msk.msra.mxu2 %vm309_vm2, %v641_v17 }
  0xf9   : > { %2229 = vmatmul.msk.f32.vlgmr.msra.gmra.mxu3 %vm305_vm3, %v644_v18  ;;  %2227 = vmatmul.msk.f32.vlgmr.msra.gmra.mxu2 %vm305_vm3, %v644_v18 }
 0x104   : > { %v702_v23 = vpop.permute.xlu1 %701  ;;  %v700_v24 = vpop.permute.xlu0 %699 }
 0x105   : > { %v712_v25 = vsel %vm703_vm7, %v702_v23, %v710_v22  ;;  %v704_v26 = vsel %vm703_vm7, %v700_v24, %v702_v23  ;;  %v789_v36 = vpop.permute.xlu2 %788 }
 0x106   : > { %v721_v27 = vmul.f32 %v2834_v20, %v712_v25  ;;  %v720_v28 = vmul.f32 %v2836_v21, %v704_v26 }
 0x108   : > { %2232 = vmatpush.msk.msrb.mxu1 %vm309_vm2, %v721_v27  ;;  %2230 = vmatpush.msk.msrb.mxu0 %vm309_vm2, %v720_v28 }
 0x109   : > { %2233 = vmatmul.msk.f32.vlgmr.msrb.gmra.mxu1 %vm305_vm3, %v723_v29  ;;  %2231 = vmatmul.msk.f32.vlgmr.msrb.gmra.mxu0 %vm305_vm3, %v723_v29 }
 0x114   : > { %v781_v38 = vpop.permute.xlu1 %780  ;;  %v779_v39 = vpop.permute.xlu0 %778 }
 0x115   : > { %v791_v40 = vsel %vm782_vm8, %v781_v38, %v789_v36  ;;  %v783_v41 = vsel %vm782_vm8, %v779_v39, %v781_v38  ;;  %v868_v52 = vpop.permute.xlu2 %867 }
 0x116   : > { %v800_v43 = vmul.f32 %v2849_v35, %v791_v40  ;;  %v799_v45 = vmul.f32 %v2851_v37, %v783_v41 }
 0x118   : > { %2236 = vmatpush.msk.msrb.mxu3 %vm309_vm2, %v800_v43  ;;  %2234 = vmatpush.msk.msrb.mxu2 %vm309_vm2, %v799_v45 }
 0x119   : > { %2237 = vmatmul.msk.f32.vlgmr.msrb.gmra.mxu3 %vm305_vm3, %v802_v44  ;;  %2235 = vmatmul.msk.f32.vlgmr.msrb.gmra.mxu2 %vm305_vm3, %v802_v44  ;;  %v2278_v44 = vld [vmem:[%s3085_s2 + $0x4] sm:$0xf] }
 0x124   : > { %v860_v53 = vpop.permute.xlu1 %859  ;;  %v858_v54 = vpop.permute.xlu0 %857 }
 0x125   : > { %v862_v55 = vsel %vm861_vm9, %v858_v54, %v860_v53  ;;  %v870_v56 = vsel %vm861_vm9, %v860_v53, %v868_v52 }
 0x126   : > { %v878_v57 = vmul.f32 %v2861_v48, %v862_v55  ;;  %v879_v58 = vmul.f32 %v2863_v49, %v870_v56 }
 0x128   : > { %2238 = vmatpush.msk.msra.mxu0 %vm309_vm2, %v878_v57  ;;  %2240 = vmatpush.msk.msra.mxu1 %vm309_vm2, %v879_v58  ;;  %v968_v58 = vld [vmem:[#allocation5 + $0x28] sm:$0xf] }
 0x129   : > { %2239 = vmatmul.msk.f32.vlgmr.msra.gmra.mxu0 %vm305_vm3, %v881_v59  ;;  %2241 = vmatmul.msk.f32.vlgmr.msra.gmra.mxu1 %vm305_vm3, %v881_v59 }
 0x12d   : > { %v937_v34 = vpop.permute.xlu0 %936 }
 0x137   : > { %v353_v61 = vpop.f32.mrf.mxu1 }
 0x13c   : > { %v402_v1 = vpop.f32.mrf.mxu3 }
 0x13d   : > { %v403_v6 = vadd.f32 %v402_v1, %v353_v61 }
 0x13e   : > { %v333_v60 = vpop.f32.mrf.mxu0  ;;  %v382_v0 = vpop.f32.mrf.mxu2 }
 0x13f   : > { %v383_v4 = vadd.f32 %v382_v0, %v333_v60 }
 0x156   : > { %v459_v2 = vpop.f32.mrf.mxu0  ;;  %v479_v3 = vpop.f32.mrf.mxu1 }
 0x157   : > { %v482_v8 = vadd.f32 %v459_v2, %v383_v4  ;;  %v483_v12 = vadd.f32 %v479_v3, %v403_v6  ;;  %v1079_v4 = vld [vmem:[#allocation5 + $0x2c] sm:$0xf] }
 0x15e   : > { %v592_v11 = vpop.f32.mrf.mxu0  ;;  %v612_v13 = vpop.f32.mrf.mxu1 }
 0x16c   : > { %v538_v5 = vpop.f32.mrf.mxu2  ;;  %v558_v7 = vpop.f32.mrf.mxu3 }
 0x16d   : > { %v561_v14 = vadd.f32 %v538_v5, %v482_v8  ;;  %v562_v15 = vadd.f32 %v558_v7, %v483_v12 }
 0x16f   : > { %v615_v17 = vadd.f32 %v592_v11, %v561_v14  ;;  %v616_v19 = vadd.f32 %v612_v13, %v562_v15 }
 0x17c   : > { %v671_v16 = vpop.f32.mrf.mxu2  ;;  %v691_v18 = vpop.f32.mrf.mxu3 }
 0x17d   : > { %v694_v23 = vadd.f32 %v671_v16, %v615_v17  ;;  %v695_v25 = vadd.f32 %v691_v18, %v616_v19  ;;  %v955_v16 = vld [vmem:[#allocation5 + $0x24] sm:$0xf]  ;;  %v1196_v19 = vld [vmem:[#allocation5 + $0x34] sm:$0xf] }
 0x186   : > { %v750_v22 = vpop.f32.mrf.mxu0  ;;  %v770_v24 = vpop.f32.mrf.mxu1 }
 0x187   : > { %v773_v26 = vadd.f32 %v750_v22, %v694_v23  ;;  %v774_v29 = vadd.f32 %v770_v24, %v695_v25 }
 0x19c   : > { %v849_v27 = vpop.f32.mrf.mxu3  ;;  %v829_v28 = vpop.f32.mrf.mxu2 }
 0x19d   : > { %v853_v32 = vadd.f32 %v849_v27, %v774_v29  ;;  %v852_v33 = vadd.f32 %v829_v28, %v773_v26 }
 0x1a6   : > { %v908_v36 = vpop.f32.mrf.mxu0  ;;  %v928_v38 = vpop.f32.mrf.mxu1 }
 0x1a7   : > { %v931_v39 = vadd.f32 %v908_v36, %v852_v33  ;;  %v932_v40 = vadd.f32 %v928_v38, %v853_v32  ;;  %v1143_v36 = vld [vmem:[#allocation5 + $0x30] sm:$0xf]  ;;  %v1322_v38 = vld [vmem:[#allocation5 + $0x3c] sm:$0xf] }
 0x1a9   : > { %v939_v41 = vadd.f32 %v937_v34, %v931_v39  ;;  %v940_v43 = vadd.f32 %v937_v34, %v932_v40 }
 0x1ab   : > { %942 = vrot.lane.b32.xlu0 %v940_v43, %s2573_s23  ;;  %956 = vrot.lane.b32.xlu1 %v940_v43, %s2574_s19 }
 0x1ac   : > { %959 = vrot.lane.b32.xlu2 %v939_v41, %s2574_s19 }
 0x1b3   : > { %1067 = vrot.lane.b32.xlu1 %v940_v43, %s2575_s5  ;;  %1134 = vrot.lane.b32.xlu0 %v939_v41, %s2576_s6 }
 0x1b4   : > { %1070 = vrot.lane.b32.xlu2 %v939_v41, %s2575_s5 }
 0x1bb   : > { %1246 = vrot.lane.b32.xlu0 %v939_v41, %s2577_s7  ;;  %946 = vrot.lane.b32.xlu1 %v939_v41, %s2573_s23 }
 0x1bc   : > { %1131 = vrot.lane.b32.xlu2 %v940_v43, %s2576_s6 }
 0x1c3   : > { %1440 = vrot.lane.b32.xlu0 %v940_v43, %s2580_s11  ;;  %1310 = vrot.lane.b32.xlu1 %v939_v41, %s2578_s8 }
 0x1c4   : > { %1312 = vrot.lane.b32.xlu2 %v940_v43, %s2578_s8 }
 0x1cb   : > { %1506 = vperm.xlu0 %2403, %v2278_v44   ;;  %1248 = vrot.lane.b32.xlu1 %v940_v43, %s2577_s7 }
 0x1cc   : > { %1438 = vrot.lane.b32.xlu2 %v939_v41, %s2580_s11 }
 0x1d3   : > { %1374 = vrot.lane.b32.xlu1 %v939_v41, %s2579_s9 }
 0x1d4   : > { %1376 = vrot.lane.b32.xlu2 %v940_v43, %s2579_s9 }
 0x206   : > { %v960_v45 = vpop.permute.xlu2 %959 }
 0x20e   : > { %v1071_v46 = vpop.permute.xlu2 %1070 }
 0x216   : > { %v1132_v59 = vpop.permute.xlu2 %1131 }
 0x21d   : > { %v943_v52 = vpop.permute.xlu0 %942  ;;  %v957_v53 = vpop.permute.xlu1 %956 }
 0x21e   : > { %v961_v54 = vsel %vm289_vm1, %v960_v45, %v957_v53  ;;  %v964_v55 = vsel %vm289_vm1, %v957_v53, %v960_v45  ;;  %v1313_v5 = vpop.permute.xlu2 %1312  ;;  %v1258_v45 = vld [vmem:[#allocation5 + $0x38] sm:$0xf] }
 0x21f   : > { %v965_v56 = vmul.f32 %v964_v55, %v2779_v42  ;;  %v966_v57 = vmul.f32 %v961_v54, %v2769_v31 }
 0x221   : > { %2242 = vmatpush.msk.msra.mxu2 %vm309_vm2, %v965_v56  ;;  %2244 = vmatpush.msk.msra.mxu3 %vm309_vm2, %v966_v57 }
 0x222   : > { %2243 = vmatmul.msk.f32.vlgmr.msra.gmra.mxu2 %vm305_vm3, %v968_v58  ;;  %2245 = vmatmul.msk.f32.vlgmr.msra.gmra.mxu3 %vm305_vm3, %v968_v58  ;;  %v1386_v58 = vld [vmem:[#allocation5 + $0x40] sm:$0xf] }
 0x225   : > { %v1068_v60 = vpop.permute.xlu1 %1067  ;;  %v1135_v61 = vpop.permute.xlu0 %1134 }
 0x226   : > { %v1072_v0 = vsel %vm417_vm4, %v1071_v46, %v1068_v60  ;;  %v1075_v1 = vsel %vm417_vm4, %v1068_v60, %v1071_v46  ;;  %v1136_v8 = vsel %vm496_vm5, %v1135_v61, %v1132_v59  ;;  %v1139_v11 = vsel %vm496_vm5, %v1132_v59, %v1135_v61  ;;  %v1439_v22 = vpop.permute.xlu2 %1438  ;;  %v1450_v46 = vld [vmem:[#allocation5 + $0x44] sm:$0xf] }
 0x227   : > { %v1076_v2 = vmul.f32 %v1075_v1, %v2794_v51  ;;  %v1077_v3 = vmul.f32 %v1072_v0, %v2792_v50  ;;  %v1140_v17 = vmul.f32 %v1139_v11, %v2812_v63  ;;  %v1141_v18 = vmul.f32 %v1136_v8, %v2810_v62 }
 0x229   : > { %2250 = vmatpush.msk.msrb.mxu2 %vm309_vm2, %v1076_v2  ;;  %2252 = vmatpush.msk.msrb.mxu3 %vm309_vm2, %v1077_v3 }
 0x22a   : > { %2251 = vmatmul.msk.f32.vlgmr.msrb.gmra.mxu2 %vm305_vm3, %v1079_v4  ;;  %2253 = vmatmul.msk.f32.vlgmr.msrb.gmra.mxu3 %vm305_vm3, %v1079_v4 }
 0x22b   : > { %2258 = vmatpush.msk.msra.mxu2 %vm309_vm2, %v939_v41  ;;  %2260 = vmatpush.msk.msra.mxu3 %vm309_vm2, %v940_v43 }
 0x22d   : > { %v1247_v6 = vpop.permute.xlu0 %1246  ;;  %v947_v7 = vpop.permute.xlu1 %946 }
 0x22e   : > { %v948_v12 = vsel %vm263_vm0, %v947_v7, %v943_v52  ;;  %v951_v13 = vsel %vm263_vm0, %v943_v52, %v947_v7  ;;  %v1377_v52 = vpop.permute.xlu2 %1376 }
 0x22f   : > { %v952_v14 = vmul.f32 %v951_v13, %v2787_v47  ;;  %v953_v15 = vmul.f32 %v948_v12, %v2767_v30 }
 0x231   : > { %2246 = vmatpush.msk.msrb.mxu0 %vm309_vm2, %v952_v14  ;;  %2248 = vmatpush.msk.msrb.mxu1 %vm309_vm2, %v953_v15 }
 0x232   : > { %2247 = vmatmul.msk.f32.vlgmr.msrb.gmra.mxu0 %vm305_vm3, %v955_v16  ;;  %2249 = vmatmul.msk.f32.vlgmr.msrb.gmra.mxu1 %vm305_vm3, %v955_v16 }
 0x233   : > { %2254 = vmatpush.msk.msra.mxu0 %vm309_vm2, %v1140_v17  ;;  %2256 = vmatpush.msk.msra.mxu1 %vm309_vm2, %v1141_v18 }
 0x234   : > { %2259 = vmatmul.msk.f32.vlgmr.msra.gmra.mxu2 %vm305_vm3, %v1196_v19  ;;  %2261 = vmatmul.msk.f32.vlgmr.msra.gmra.mxu3 %vm305_vm3, %v1196_v19 }
 0x235   : > { %v1441_v23 = vpop.permute.xlu0 %1440  ;;  %v1311_v24 = vpop.permute.xlu1 %1310 }
 0x236   : > { %v1442_v25 = vsel %vm861_vm9, %v1439_v22, %v1441_v23  ;;  %v1446_v26 = vsel %vm861_vm9, %v1441_v23, %v1439_v22  ;;  %v1314_v27 = vsel %vm703_vm7, %v1311_v24, %v1313_v5  ;;  %v1318_v28 = vsel %vm703_vm7, %v1313_v5, %v1311_v24 }
 0x237   : > { %v1447_v29 = vmul.f32 %v1442_v25, %v2861_v48  ;;  %v1448_v32 = vmul.f32 %v1446_v26, %v2863_v49  ;;  %v1319_v33 = vmul.f32 %v1314_v27, %v2836_v21  ;;  %v1320_v34 = vmul.f32 %v1318_v28, %v2834_v20 }
 0x239   : > { %2266 = vmatpush.msk.msrb.mxu2 %vm309_vm2, %v1319_v33  ;;  %2268 = vmatpush.msk.msrb.mxu3 %vm309_vm2, %v1320_v34 }
 0x23a   : > { %2255 = vmatmul.msk.f32.vlgmr.msra.gmra.mxu0 %vm305_vm3, %v1143_v36  ;;  %2257 = vmatmul.msk.f32.vlgmr.msra.gmra.mxu1 %vm305_vm3, %v1143_v36 }
 0x23b   : > { %2274 = vmatpush.msk.msra.mxu2 %vm309_vm2, %v1447_v29  ;;  %2276 = vmatpush.msk.msra.mxu3 %vm309_vm2, %v1448_v32 }
 0x23c   : > { %2267 = vmatmul.msk.f32.vlgmr.msrb.gmra.mxu2 %vm305_vm3, %v1322_v38  ;;  %2269 = vmatmul.msk.f32.vlgmr.msrb.gmra.mxu3 %vm305_vm3, %v1322_v38 }
 0x23d   : > { %v1249_v39 = vpop.permute.xlu1 %1248 }
 0x23e   : > { %v1250_v40 = vsel %vm624_vm6, %v1247_v6, %v1249_v39  ;;  %v1254_v41 = vsel %vm624_vm6, %v1249_v39, %v1247_v6  ;;  %v1507_v39 = vpop.permute.xlu0 %1506 }
 0x23f   : > { %v1255_v43 = vmul.f32 %v1250_v40, %v2824_v10  ;;  %v1256_v44 = vmul.f32 %v1254_v41, %v2822_v9 }
 0x241   : > { %2262 = vmatpush.msk.msrb.mxu0 %vm309_vm2, %v1255_v43  ;;  %2264 = vmatpush.msk.msrb.mxu1 %vm309_vm2, %v1256_v44 }
 0x242   : > { %2263 = vmatmul.msk.f32.vlgmr.msrb.gmra.mxu0 %vm305_vm3, %v1258_v45  ;;  %2265 = vmatmul.msk.f32.vlgmr.msrb.gmra.mxu1 %vm305_vm3, %v1258_v45 }
 0x244   : > { %2275 = vmatmul.msk.f32.vlgmr.msra.gmra.mxu2 %vm305_vm3, %v1450_v46  ;;  %2277 = vmatmul.msk.f32.vlgmr.msra.gmra.mxu3 %vm305_vm3, %v1450_v46 }
 0x245   : > { %v1375_v53 = vpop.permute.xlu1 %1374 }
 0x246   : > { %v1378_v54 = vsel %vm782_vm8, %v1375_v53, %v1377_v52  ;;  %v1382_v55 = vsel %vm782_vm8, %v1377_v52, %v1375_v53 }
 0x247   : > { %v1383_v56 = vmul.f32 %v1378_v54, %v2851_v37  ;;  %v1384_v57 = vmul.f32 %v1382_v55, %v2849_v35 }
 0x249   : > { %2270 = vmatpush.msk.msra.mxu0 %vm309_vm2, %v1383_v56  ;;  %2272 = vmatpush.msk.msra.mxu1 %vm309_vm2, %v1384_v57  ;;  %v1525_v56 = vld [vmem:[#allocation5 + $0x48] sm:$0xf] }
 0x24a   : > { %2271 = vmatmul.msk.f32.vlgmr.msra.gmra.mxu0 %vm305_vm3, %v1386_v58  ;;  %2273 = vmatmul.msk.f32.vlgmr.msra.gmra.mxu1 %vm305_vm3, %v1386_v58 }
 0x2a5   : > { %v995_v59 = vpop.f32.mrf.mxu2  ;;  %v1015_v60 = vpop.f32.mrf.mxu3 }
 0x2ad   : > { %v1106_v61 = vpop.f32.mrf.mxu2  ;;  %v1126_v0 = vpop.f32.mrf.mxu3 }
 0x2af   : > { %v1044_v1 = vpop.f32.mrf.mxu0  ;;  %v1064_v2 = vpop.f32.mrf.mxu1 }
 0x2b0   : > { %v1045_v3 = vadd.f32 %v1044_v1, %v995_v59  ;;  %v1065_v4 = vadd.f32 %v1064_v2, %v1015_v60 }
 0x2b2   : > { %v1129_v11 = vadd.f32 %v1106_v61, %v1045_v3  ;;  %v1130_v12 = vadd.f32 %v1126_v0, %v1065_v4  ;;  %v1538_v3 = vld [vmem:[#allocation5 + $0x4c] sm:$0xf] }
 0x2b7   : > { %v1170_v5 = vpop.f32.mrf.mxu0  ;;  %v1190_v6 = vpop.f32.mrf.mxu1 }
 0x2b8   : > { %v1221_v7 = vpop.f32.mrf.mxu2  ;;  %v1241_v8 = vpop.f32.mrf.mxu3  ;;  %v1193_v13 = vadd.f32 %v1170_v5, %v1129_v11  ;;  %v1194_v14 = vadd.f32 %v1190_v6, %v1130_v12  ;;  %v1713_v11 = vld [vmem:[#allocation5 + $0x54] sm:$0xf] }
 0x2ba   : > { %v1244_v17 = vadd.f32 %v1221_v7, %v1193_v13  ;;  %v1245_v18 = vadd.f32 %v1241_v8, %v1194_v14  ;;  %v1649_v8 = vld [vmem:[#allocation5 + $0x50] sm:$0xf] }
 0x2bf   : > { %v1285_v15 = vpop.f32.mrf.mxu0  ;;  %v1305_v16 = vpop.f32.mrf.mxu1 }
 0x2c0   : > { %v1349_v19 = vpop.f32.mrf.mxu2  ;;  %v1369_v22 = vpop.f32.mrf.mxu3  ;;  %v1308_v23 = vadd.f32 %v1285_v15, %v1244_v17  ;;  %v1309_v24 = vadd.f32 %v1305_v16, %v1245_v18 }
 0x2c2   : > { %v1372_v25 = vadd.f32 %v1349_v19, %v1308_v23  ;;  %v1373_v26 = vadd.f32 %v1369_v22, %v1309_v24  ;;  %v1766_v23 = vld [vmem:[#allocation5 + $0x58] sm:$0xf]  ;;  %v1828_v24 = vld [vmem:[#allocation5 + $0x5c] sm:$0xf] }
 0x2c7   : > { %v1413_v27 = vpop.f32.mrf.mxu0  ;;  %v1433_v28 = vpop.f32.mrf.mxu1 }
 0x2c8   : > { %v1436_v29 = vadd.f32 %v1413_v27, %v1372_v25  ;;  %v1437_v32 = vadd.f32 %v1433_v28, %v1373_v26  ;;  %v1477_v33 = vpop.f32.mrf.mxu2  ;;  %v1497_v34 = vpop.f32.mrf.mxu3  ;;  %v1892_v27 = vld [vmem:[#allocation5 + $0x60] sm:$0xf]  ;;  %v1956_v28 = vld [vmem:[#allocation5 + $0x64] sm:$0xf] }
 0x2ca   : > { %v1500_v36 = vadd.f32 %v1477_v33, %v1436_v29  ;;  %v1501_v38 = vadd.f32 %v1497_v34, %v1437_v32 }
 0x2cc   : > { %v1509_v40 = vadd.f32 %v1507_v39, %v1500_v36  ;;  %v1510_v41 = vadd.f32 %v1507_v39, %v1501_v38  ;;  %v2020_v36 = vld [vmem:[#allocation5 + $0x68] sm:$0xf] }
 0x2ce   : > { %1526 = vrot.lane.b32.xlu0 %v1510_v41, %s2574_s19  ;;  %1512 = vrot.lane.b32.xlu1 %v1510_v41, %s2573_s23 }
 0x2cf   : > { %1516 = vrot.lane.b32.xlu2 %v1509_v40, %s2573_s23 }
 0x2d6   : > { %1640 = vrot.lane.b32.xlu0 %v1509_v40, %s2575_s5  ;;  %1529 = vrot.lane.b32.xlu1 %v1509_v40, %s2574_s19 }
 0x2d7   : > { %1637 = vrot.lane.b32.xlu2 %v1510_v41, %s2575_s5  ;;  %s2099_s5 = scalar_lea.hbm %s3087_s4, %s2322_s30 }
 0x2d8   : > { %s2103_s22 = sshll.u32 %s2099_s5, 4  ;;  %s2104_s22 = int_to_ptr.hbm [resolvable:$true] %s2103_s22 }
 0x2de   : > { %1816 = vrot.lane.b32.xlu0 %v1509_v40, %s2577_s7  ;;  %1701 = vrot.lane.b32.xlu1 %v1510_v41, %s2576_s6 }
 0x2df   : > { %1704 = vrot.lane.b32.xlu2 %v1509_v40, %s2576_s6  ;;  %s248_s6 = scalar_lea.vmem [#allocation8], %s2202_s28  ;;  %s2515_s28 = scalar_lea.hbm %s3087_s4, 16 }
 0x2e6   : > { %1882 = vrot.lane.b32.xlu0 %v1510_v41, %s2578_s8  ;;  %1818 = vrot.lane.b32.xlu1 %v1510_v41, %s2577_s7  ;;  %s2101_s7 = sshll.u32 %s248_s6, 4  ;;  %s2102_s7 = int_to_ptr.vmem [resolvable:$true] %s2101_s7 }
 0x2e7   : > { %1880 = vrot.lane.b32.xlu2 %v1509_v40, %s2578_s8  ;;  %s2088_s8 = scalar_lea.sflag [#allocation4], %s2707_s20 }
 0x2ee   : > { %2008 = vrot.lane.b32.xlu0 %v1509_v40, %s2580_s11  ;;  %1944 = vrot.lane.b32.xlu1 %v1509_v40, %s2579_s9 }
 0x2ef   : > { %1946 = vrot.lane.b32.xlu2 %v1510_v41, %s2579_s9  ;;  %s2509_s9 = sshra.s32 %s2104_s22, 4  ;;  %s2510_s9 = int_to_ptr.hbm [resolvable:$true] %s2509_s9 }
 0x2f0   : > { %p2516_p12 = scmp.lt.s32.totalorder %s2510_s9, %s3087_s4 }
 0x2f6   : > { %2010 = vrot.lane.b32.xlu1 %v1510_v41, %s2580_s11  ;;  %s2511_s11 = scalar_lea.hbm %s2510_s9, 8 }
 0x2f7   : > { %p2512_p1 = scmp.ne.s32.totalorder %s2510_s9, %s2511_s11  ;;  %p2517_p7 = scmp.lt.s32.totalorder %s2515_s28, %s2511_s11 }
 0x2f9   : > { %p2513_p3 = pnand %p2512_p1, %p2676_p4  ;;  %p2518_p8 = por %p2517_p7, %p2516_p12 }
 0x2fb   : > { %p2514_p5 = pneg %p2513_p3 }
 0x2fd   : > { %p2519_p9 = pnand %p2518_p8, %p2514_p5 }
 0x329   : > { %v1517_v43 = vpop.permute.xlu2 %1516 }
 0x331   : > { %v1638_v53 = vpop.permute.xlu2 %1637 }
 0x339   : > { %v1705_v4 = vpop.permute.xlu2 %1704 }
 0x340   : > { %v1527_v44 = vpop.permute.xlu0 %1526  ;;  %v1513_v45 = vpop.permute.xlu1 %1512 }
 0x341   : > { %v1518_v46 = vsel %vm263_vm0, %v1517_v43, %v1513_v45  ;;  %v1521_v52 = vsel %vm263_vm0, %v1513_v45, %v1517_v43  ;;  %v1881_v12 = vpop.permute.xlu2 %1880 }
 0x342   : > { %v1522_v54 = vmul.f32 %v1521_v52, %v2787_v47  ;;  %v1523_v55 = vmul.f32 %v1518_v46, %v2767_v30 }
 0x344   : > { %2283 = vmatpush.msk.msrb.mxu2 %vm309_vm2, %v1522_v54  ;;  %2285 = vmatpush.msk.msrb.mxu3 %vm309_vm2, %v1523_v55 }
 0x345   : > { %2284 = vmatmul.msk.f32.vlgmr.msrb.gmra.mxu2 %vm305_vm3, %v1525_v56  ;;  %2286 = vmatmul.msk.f32.vlgmr.msrb.gmra.mxu3 %vm305_vm3, %v1525_v56 }
 0x348   : > { %v1641_v57 = vpop.permute.xlu0 %1640  ;;  %v1530_v58 = vpop.permute.xlu1 %1529 }
 0x349   : > { %v1642_v59 = vsel %vm417_vm4, %v1641_v57, %v1638_v53  ;;  %v1645_v60 = vsel %vm417_vm4, %v1638_v53, %v1641_v57  ;;  %v1531_v61 = vsel %vm289_vm1, %v1530_v58, %v1527_v44  ;;  %v1534_v47 = vsel %vm289_vm1, %v1527_v44, %v1530_v58 }
 0x34a   : > { %v1646_v30 = vmul.f32 %v1645_v60, %v2794_v51  ;;  %v1647_v0 = vmul.f32 %v1642_v59, %v2792_v50  ;;  %v1535_v1 = vmul.f32 %v1534_v47, %v2779_v42  ;;  %v1536_v2 = vmul.f32 %v1531_v61, %v2769_v31  ;;  %v2315_v42 = vld [vmem:[%s3085_s2 + $0x8] sm:$0xf] }
 0x34b   : > { %2076 = vperm.xlu2 %2404, %v2315_v42  }
 0x34c   : > { %2279 = vmatpush.msk.msrb.mxu0 %vm309_vm2, %v1535_v1  ;;  %2281 = vmatpush.msk.msrb.mxu1 %vm309_vm2, %v1536_v2 }
 0x34d   : > { %2280 = vmatmul.msk.f32.vlgmr.msrb.gmra.mxu0 %vm305_vm3, %v1538_v3  ;;  %2282 = vmatmul.msk.f32.vlgmr.msrb.gmra.mxu1 %vm305_vm3, %v1538_v3 }
 0x34e   : > { %2287 = vmatpush.msk.msra.mxu0 %vm309_vm2, %v1646_v30  ;;  %2289 = vmatpush.msk.msra.mxu1 %vm309_vm2, %v1647_v0 }
 0x350   : > { %2295 = vmatpush.msk.msrb.mxu0 %vm309_vm2, %v1509_v40  ;;  %2297 = vmatpush.msk.msrb.mxu1 %vm309_vm2, %v1510_v41  ;;  %v1817_v31 = vpop.permute.xlu0 %1816  ;;  %v1702_v50 = vpop.permute.xlu1 %1701 }
 0x351   : > { %v1706_v51 = vsel %vm496_vm5, %v1705_v4, %v1702_v50  ;;  %v1709_v5 = vsel %vm496_vm5, %v1702_v50, %v1705_v4 }
 0x352   : > { %v1710_v6 = vmul.f32 %v1709_v5, %v2812_v63  ;;  %v1711_v7 = vmul.f32 %v1706_v51, %v2810_v62 }
 0x354   : > { %2291 = vmatpush.msk.msra.mxu2 %vm309_vm2, %v1710_v6  ;;  %2293 = vmatpush.msk.msra.mxu3 %vm309_vm2, %v1711_v7 }
 0x355   : > { %2288 = vmatmul.msk.f32.vlgmr.msra.gmra.mxu0 %vm305_vm3, %v1649_v8  ;;  %2290 = vmatmul.msk.f32.vlgmr.msra.gmra.mxu1 %vm305_vm3, %v1649_v8 }
 0x356   : > { %2292 = vmatmul.msk.f32.vlgmr.msra.gmra.mxu2 %vm305_vm3, %v1713_v11  ;;  %2294 = vmatmul.msk.f32.vlgmr.msra.gmra.mxu3 %vm305_vm3, %v1713_v11 }
 0x358   : > { %v1883_v13 = vpop.permute.xlu0 %1882  ;;  %v1819_v14 = vpop.permute.xlu1 %1818 }
 0x359   : > { %v1884_v63 = vsel %vm703_vm7, %v1881_v12, %v1883_v13  ;;  %v1888_v62 = vsel %vm703_vm7, %v1883_v13, %v1881_v12  ;;  %v1820_v15 = vsel %vm624_vm6, %v1817_v31, %v1819_v14  ;;  %v1824_v16 = vsel %vm624_vm6, %v1819_v14, %v1817_v31 }
 0x35a   : > { %v1889_v17 = vmul.f32 %v1884_v63, %v2836_v21  ;;  %v1890_v18 = vmul.f32 %v1888_v62, %v2834_v20  ;;  %v1825_v19 = vmul.f32 %v1820_v15, %v2824_v10  ;;  %v1826_v22 = vmul.f32 %v1824_v16, %v2822_v9  ;;  %v1947_v10 = vpop.permute.xlu2 %1946 }
 0x35c   : > { %2299 = vmatpush.msk.msrb.mxu2 %vm309_vm2, %v1825_v19  ;;  %2301 = vmatpush.msk.msrb.mxu3 %vm309_vm2, %v1826_v22 }
 0x35d   : > { %2303 = vmatpush.msk.msra.mxu0 %vm309_vm2, %v1889_v17  ;;  %2305 = vmatpush.msk.msra.mxu1 %vm309_vm2, %v1890_v18 }
 0x35e   : > { %2296 = vmatmul.msk.f32.vlgmr.msrb.gmra.mxu0 %vm305_vm3, %v1766_v23  ;;  %2298 = vmatmul.msk.f32.vlgmr.msrb.gmra.mxu1 %vm305_vm3, %v1766_v23 }
 0x35f   : > { %2300 = vmatmul.msk.f32.vlgmr.msrb.gmra.mxu2 %vm305_vm3, %v1828_v24  ;;  %2302 = vmatmul.msk.f32.vlgmr.msrb.gmra.mxu3 %vm305_vm3, %v1828_v24 }
 0x360   : > { %v1945_v9 = vpop.permute.xlu1 %1944  ;;  %v2009_v29 = vpop.permute.xlu0 %2008 }
 0x361   : > { %v1948_v20 = vsel %vm782_vm8, %v1945_v9, %v1947_v10  ;;  %v1952_v21 = vsel %vm782_vm8, %v1947_v10, %v1945_v9 }
 0x362   : > { %v1953_v25 = vmul.f32 %v1948_v20, %v2851_v37  ;;  %v1954_v26 = vmul.f32 %v1952_v21, %v2849_v35 }
 0x364   : > { %2307 = vmatpush.msk.msra.mxu2 %vm309_vm2, %v1953_v25  ;;  %2309 = vmatpush.msk.msra.mxu3 %vm309_vm2, %v1954_v26 }
 0x366   : > { %2304 = vmatmul.msk.f32.vlgmr.msra.gmra.mxu0 %vm305_vm3, %v1892_v27  ;;  %2306 = vmatmul.msk.f32.vlgmr.msra.gmra.mxu1 %vm305_vm3, %v1892_v27 }
 0x367   : > { %2308 = vmatmul.msk.f32.vlgmr.msra.gmra.mxu2 %vm305_vm3, %v1956_v28  ;;  %2310 = vmatmul.msk.f32.vlgmr.msra.gmra.mxu3 %vm305_vm3, %v1956_v28 }
 0x368   : > { %v2011_v32 = vpop.permute.xlu1 %2010 }
 0x369   : > { %v2012_v37 = vsel %vm861_vm9, %v2009_v29, %v2011_v32  ;;  %v2016_v35 = vsel %vm861_vm9, %v2011_v32, %v2009_v29 }
 0x36a   : > { %v2017_v33 = vmul.f32 %v2012_v37, %v2861_v48  ;;  %v2018_v34 = vmul.f32 %v2016_v35, %v2863_v49 }
 0x36c   : > { %2311 = vmatpush.msk.msrb.mxu0 %vm309_vm2, %v2017_v33  ;;  %2313 = vmatpush.msk.msrb.mxu1 %vm309_vm2, %v2018_v34 }
 0x36e   : > { %2312 = vmatmul.msk.f32.vlgmr.msrb.gmra.mxu0 %vm305_vm3, %v2020_v36  ;;  %2314 = vmatmul.msk.f32.vlgmr.msrb.gmra.mxu1 %vm305_vm3, %v2020_v36 }
 0x3a5   : > { %v2077_v6 = vpop.permute.xlu2 %2076 }
 0x3c8   : > { %v1614_v40 = vpop.f32.mrf.mxu2  ;;  %v1634_v41 = vpop.f32.mrf.mxu3 }
 0x3ca   : > { %v1565_v38 = vpop.f32.mrf.mxu0  ;;  %v1585_v39 = vpop.f32.mrf.mxu1 }
 0x3cb   : > { %v1615_v48 = vadd.f32 %v1614_v40, %v1565_v38  ;;  %v1635_v52 = vadd.f32 %v1634_v41, %v1585_v39 }
 0x3d2   : > { %v1676_v43 = vpop.f32.mrf.mxu0  ;;  %v1696_v44 = vpop.f32.mrf.mxu1 }
 0x3d3   : > { %v1699_v54 = vadd.f32 %v1676_v43, %v1615_v48  ;;  %v1700_v55 = vadd.f32 %v1696_v44, %v1635_v52 }
 0x3d9   : > { %v1740_v45 = vpop.f32.mrf.mxu2  ;;  %v1760_v46 = vpop.f32.mrf.mxu3 }
 0x3da   : > { %v1763_v56 = vadd.f32 %v1740_v45, %v1699_v54  ;;  %v1764_v57 = vadd.f32 %v1760_v46, %v1700_v55 }
 0x3db   : > { %v1791_v49 = vpop.f32.mrf.mxu0  ;;  %v1811_v53 = vpop.f32.mrf.mxu1 }
 0x3dc   : > { %v1814_v60 = vadd.f32 %v1791_v49, %v1763_v56  ;;  %v1815_v61 = vadd.f32 %v1811_v53, %v1764_v57 }
 0x3e2   : > { %v1855_v58 = vpop.f32.mrf.mxu2  ;;  %v1875_v59 = vpop.f32.mrf.mxu3 }
 0x3e3   : > { %v1919_v47 = vpop.f32.mrf.mxu0  ;;  %v1939_v30 = vpop.f32.mrf.mxu1  ;;  %v1878_v0 = vadd.f32 %v1855_v58, %v1814_v60  ;;  %v1879_v1 = vadd.f32 %v1875_v59, %v1815_v61 }
 0x3e5   : > { %v1942_v2 = vadd.f32 %v1919_v47, %v1878_v0  ;;  %v1943_v3 = vadd.f32 %v1939_v30, %v1879_v1 }
 0x3ea   : > { %v1983_v4 = vpop.f32.mrf.mxu2  ;;  %v2003_v42 = vpop.f32.mrf.mxu3 }
 0x3eb   : > { %v2006_v31 = vadd.f32 %v1983_v4, %v1942_v2  ;;  %v2007_v50 = vadd.f32 %v2003_v42, %v1943_v3  ;;  %v2047_v51 = vpop.f32.mrf.mxu0  ;;  %v2067_v5 = vpop.f32.mrf.mxu1 }
 0x3ed   : > { %v2070_v7 = vadd.f32 %v2047_v51, %v2006_v31  ;;  %v2071_v8 = vadd.f32 %v2067_v5, %v2007_v50 }
 0x3ef   : > { %v2080_v11 = vadd.f32 %v2077_v6, %v2071_v8  ;;  %v2079_v12 = vadd.f32 %v2077_v6, %v2070_v7 }
 0x3f1   : > { %v2083_v13 = vrot.slane %v2080_v11, 4 }
 0x3f3   : > { %v2084_v14 = vsel %vm309_vm2, %v2079_v12, %v2083_v13 }
 0x3f4   : > { %2086 = vst [vmem:[%s248_s6] sm:$0xff] %v2084_v14 }
 0x3f5   : > { %2522 = shalt.err (!%p2519_p9)
}
 0x3f6   : > { %2333 = dma.vmem_to_hbm [thread:$0]  (%p2676_p4), %s2102_s7, 128, %s2104_s22, %s2088_s8  }
 0x3f7 PF: > { %s2115_s20 = sand.u32 1, %s2553_s15   ;;  %p3094_p10 = scmp.ge.s32.totalorder %s2565_s18, 2 }
 0x3f8   : > { %s2116_s14 = scalar_lea.sflag [#allocation4], %s2115_s20 }
 0x3f9   : > { %p2347_p13 = pnand %p3094_p10, %p2680_p6 }
 0x3fb   : > { %p2348_p11 = pneg %p2347_p13 }
 0x3fd   : > { %2548 = dma.done.wait (%p2348_p11), %s2116_s14, 128  }
 0x3fe   : > { %2550 = vsyncadd (%p2348_p11), %s2116_s14, 4294967168  ;;  %p18_p0 = scmp.ge.s32.totalorder %s2650_s10, 4   ;;  %s3095_s15 = smov %s2557_s16 }
 0x3ff   : > { %s3096_s16 = smov %s2561_s17  ;;  %s3097_s17 = smov %s2661_s13 }
 0x400   : > { %s3098_s18 = smov %s2650_s10  ;;  %20 = sbr.rel (!%p18_p0) target bundleno = 6 (0x6), region = 124 }
 0x405   :  { %2122 = vsyncpa [#allocation3], 1 }
 0x406   :  { %2124 = vsyncpa [#allocation3 + $0x1], 1 }
 0x407   :  { %2125 = vsyncpa [#allocation6], 1 }
 0x408   :  { %2126 = vsyncpa [#allocation4], 1 }
 0x409   :  { %2128 = vsyncpa [#allocation4 + $0x1], 1 }

</bundles_post_ra>
